<compile_context>
chip_gen: v7x
topology: tpu7x:2x2x1
jax: 0.10.0
libtpu: 0.0.40
codegen_flags: <defaults>
</compile_context>

<pallas_src>
import functools

import jax
import jax.numpy as jnp
from jax.experimental import pallas as pl
from jax.experimental.pallas import tpu as pltpu

_LANE = 128
_SUBLANE = 8


def _round_up(x, m):
    return ((x + m - 1) // m) * m


def nystrom_kernel(x_ref, saug_ref, w1t_ref, w2t_ref, b2_ref, o_ref, *,
                   approx_recip):
    # --- 1) K[i, j] = exp(-||x_i - s_j||), distances entirely on the MXU -------
    # x_ref rows are [x_i, ||x_i||^2, 1, 0...]; saug_ref rows are
    # [-2 s^T ; 1 ; ||s||^2 ; 0...]  =>  x_aug @ s_aug = ||x_i||^2 - 2 x_i.s_j + ||s_j||^2.
    # HIGHEST precision keeps the cancellation in true f32.
    d2 = jnp.dot(x_ref[...], saug_ref[...],
                 preferred_element_type=jnp.float32,
                 precision=jax.lax.Precision.HIGHEST)               # (TB, Sp)
    d2 = jnp.maximum(d2, 0.0)
    k = jnp.exp(-jnp.sqrt(d2))                                      # (TB, Sp)
    # Padded sample columns carry ||s||^2 = 1e12  ->  K is exactly 0 there.

    # --- 2) Linear(S, S, bias=False): k @ W1^T (pre-transposed, resident) ------
    mm_dtype = w1t_ref.dtype
    z = jnp.dot(k.astype(mm_dtype), w1t_ref[...],
                preferred_element_type=jnp.float32)                 # (TB, Sp) f32

    # --- 3) Mish with a single transcendental (+ EUP approx reciprocal) --------
    # tanh(softplus(z)) = ((1+e^z)^2 - 1)/((1+e^z)^2 + 1); stable via u=exp(-|z|):
    #   z >= 0:  (1 + 2u) / (1 + 2u + 2u^2)
    #   z <  0:  (u^2 + 2u) / (u^2 + 2u + 2)
    u = jnp.exp(-jnp.abs(z))
    u2 = u * u
    pos = z >= 0.0
    num = jnp.where(pos, 1.0 + 2.0 * u, u2 + 2.0 * u)
    den = jnp.where(pos, 1.0 + 2.0 * u + 2.0 * u2, u2 + 2.0 * u + 2.0)
    if approx_recip:
        z = z * (num * pl.reciprocal(den, approx=True))
    else:
        z = z * (num / den)

    # --- 4) Linear(S, d_out): z @ W2^T + b2 -------------------------------------
    y = jnp.dot(z.astype(mm_dtype), w2t_ref[...],
                preferred_element_type=jnp.float32)                 # (TB, Dop)
    y = y + b2_ref[...]                      # padded classes carry -1e30 bias

    # --- 5) log_softmax over the class dim (padded classes -> exp == 0) --------
    m = jnp.max(y, axis=1, keepdims=True)
    shifted = y - m
    lse = jnp.log(jnp.sum(jnp.exp(shifted), axis=1, keepdims=True))
    o_ref[...] = (shifted - lse).astype(o_ref.dtype)


def nystrom_net_pure_forward(x, samples, w1, w2, b2, *, tile_b=None,
                             mm_dtype=jnp.bfloat16, approx_mish=True):
    """NystromNetPure.forward (if_fix_nystrom=False).

    x: (N, d_in), samples: (S, d_in), w1: (S, S), w2: (d_out, S), b2: (d_out,).
    mm_dtype: MXU operand dtype for the two Linear matmuls (f32 accumulation).
    approx_mish: use the EUP approx reciprocal inside mish (fast path).
    """
    N, d_in = x.shape
    S = samples.shape[0]
    d_out = w2.shape[0]

    S_p = _round_up(S, _LANE)
    d_out_p = _round_up(d_out, _LANE)
    d_aug = d_in + 2                          # [x, ||x||^2, 1]
    d_aug_p = _round_up(d_aug, _SUBLANE)      # tiny pad; NOT padded to 128 lanes

    f32 = jnp.float32

    # --- grid-invariant precompute / layout hoisting (all transposes here) -----
    x_f = x.astype(f32)
    xsq = jnp.sum(x_f * x_f, axis=1, keepdims=True)                 # (N, 1)
    x_aug = jnp.concatenate(
        [x_f, xsq, jnp.ones((N, 1), f32), jnp.zeros((N, d_aug_p - d_aug), f32)],
        axis=1)                                                     # (N, d_aug_p)

    s_f = samples.astype(f32)
    ssq = jnp.sum(s_f * s_f, axis=1)                                # (S,)
    s_aug = jnp.zeros((d_aug_p, S_p), f32)
    s_aug = s_aug.at[:d_in, :S].set(-2.0 * s_f.T)                   # -2 s^T
    s_aug = s_aug.at[d_in, :S].set(1.0)                             # picks up ||x||^2
    s_aug = s_aug.at[d_in + 1, :S].set(ssq)                         # + ||s||^2
    s_aug = s_aug.at[d_in + 1, S:].set(1e12)                        # padded samples -> K == 0

    # PyTorch Linear weights are (out, in); pre-transpose to (in, out) and
    # zero-pad so padded K / z columns contribute exactly nothing.
    w1_t = (jnp.zeros((S_p, S_p), f32).at[:S, :S].set(w1.astype(f32))
            .T.astype(mm_dtype))                                    # (S_in_p, S_out_p)
    w2_t = (jnp.zeros((d_out_p, S_p), f32).at[:d_out, :S].set(w2.astype(f32))
            .T.astype(mm_dtype))                                    # (S_p, d_out_p)
    b2_p = jnp.full((1, d_out_p), -1e30, f32).at[0, :d_out].set(b2.astype(f32))

    # --- VMEM budget (hardware-derived) and budget-driven tile_b ----------------
    w_bytes = jnp.dtype(mm_dtype).itemsize
    # Resident (grid-invariant) operands; x2 because Pallas double-buffers inputs.
    resident = 2 * (d_aug_p * S_p * 4
                    + S_p * S_p * w_bytes
                    + S_p * d_out_p * w_bytes
                    + d_out_p * 4)
    # Per batch-row VMEM: double-buffered x/out tiles + live f32 intermediates
    # (d2/k/z/u/num/den/y) + bf16 casts, with slack.
    per_row = 2 * (d_aug_p + d_out_p) * 4 + (8 * S_p + 2 * d_out_p) * 4

    try:
        vmem_cap = pltpu.get_tpu_info().vmem_capacity_bytes  # 64 MiB v7x, 128 MiB v5e/v6e
    except Exception:
        vmem_cap = 64 * 2 ** 20
    budget = int(0.85 * vmem_cap)

    rows_needed = _round_up(N, _SUBLANE)
    if tile_b is None:
        fit_rows = (max(budget - resident, per_row * _SUBLANE)
                    // per_row) // _SUBLANE * _SUBLANE
        tile_b = max(_SUBLANE, min(1024, fit_rows, rows_needed))
        if tile_b >= rows_needed and rows_needed >= 128:
            # Split into >= 2 tiles so both v7x TensorCores get work.
            tile_b = _round_up((rows_needed + 1) // 2, _SUBLANE)
    assert tile_b % _SUBLANE == 0, "tile_b must be a multiple of 8 (f32 sublane)"

    N_p = _round_up(N, tile_b)
    grid_b = N_p // tile_b
    if N_p != N:
        x_aug = jnp.zeros((N_p, d_aug_p), f32).at[:N].set(x_aug)

    vmem_est = resident + tile_b * per_row
    vmem_limit = int(min(budget, max(int(1.3 * vmem_est), 32 * 2 ** 20)))

    flops = 2 * N_p * (d_aug_p * S_p + S_p * S_p + S_p * d_out_p)
    transcendentals = N_p * (4 * S_p + d_out_p + 1)
    bytes_accessed = (N_p * d_aug_p * 4 + d_aug_p * S_p * 4
                      + (S_p * S_p + S_p * d_out_p) * w_bytes
                      + d_out_p * 4 + N_p * d_out_p * 4)

    kernel = functools.partial(nystrom_kernel, approx_recip=approx_mish)

    out_p = pl.pallas_call(
        kernel,
        out_shape=jax.ShapeDtypeStruct((N_p, d_out_p), jnp.float32),
        grid_spec=pltpu.PrefetchScalarGridSpec(
            num_scalar_prefetch=0,
            grid=(grid_b,),
            in_specs=[
                pl.BlockSpec((tile_b, d_aug_p), lambda i: (i, 0)),   # x tile (full-width, no 128-lane pad)
                pl.BlockSpec((d_aug_p, S_p), lambda i: (0, 0)),      # augmented samples (resident)
                pl.BlockSpec((S_p, S_p), lambda i: (0, 0)),          # W1^T (resident)
                pl.BlockSpec((S_p, d_out_p), lambda i: (0, 0)),      # W2^T (resident)
                pl.BlockSpec((1, d_out_p), lambda i: (0, 0)),        # b2 (resident)
            ],
            out_specs=pl.BlockSpec((tile_b, d_out_p), lambda i: (i, 0)),
        ),
        compiler_params=pltpu.CompilerParams(
            dimension_semantics=("parallel",),
            vmem_limit_bytes=vmem_limit,
        ),
        cost_estimate=pl.CostEstimate(
            flops=flops,
            transcendentals=transcendentals,
            bytes_accessed=bytes_accessed,
        ),
    )(x_aug, s_aug, w1_t, w2_t, b2_p)

    return out_p[:N, :d_out]


def _reference(x, samples, w1, w2, b2):
    # pure-JAX reference mirroring the PyTorch forward
    diff = x[:, None, :] - samples[None, :, :]
    k = jnp.exp(-jnp.linalg.norm(diff, axis=-1))
    z = k @ w1.T
    z = z * jnp.tanh(jax.nn.softplus(z))
    y = z @ w2.T + b2
    return jax.nn.log_softmax(y, axis=1)


if __name__ == "__main__":
    # small shapes consistent with the module's forward
    N, d_in, S, d_out = 256, 16, 32, 8

    key = jax.random.PRNGKey(0)
    k_x, k_s, k_w1, k_w2, k_b2 = jax.random.split(key, 5)

    x = jax.random.normal(k_x, (N, d_in), dtype=jnp.float32)
    samples = jax.random.normal(k_s, (S, d_in), dtype=jnp.float32)

    # deterministic parameter init (PyTorch-Linear-like uniform bounds)
    bound = 1.0 / jnp.sqrt(S)
    w1 = jax.random.uniform(k_w1, (S, S), jnp.float32, -bound, bound)
    w2 = jax.random.uniform(k_w2, (d_out, S), jnp.float32, -bound, bound)
    b2 = jax.random.uniform(k_b2, (d_out,), jnp.float32, -bound, bound)

    ref = _reference(x, samples, w1, w2, b2)

    # Precise path: f32 matmul operands + exact mish divide (strict check).
    out_f32 = nystrom_net_pure_forward(x, samples, w1, w2, b2,
                                       mm_dtype=jnp.float32, approx_mish=False)
    out_f32 = jax.block_until_ready(out_f32)
    assert out_f32.shape == (N, d_out)
    assert jnp.allclose(out_f32, ref, atol=1e-4, rtol=1e-4), \
        "f32 kernel mismatch vs reference"

    # Default fast path: bf16 MXU operands (f32 accumulation) + approx mish.
    out_fast = nystrom_net_pure_forward(x, samples, w1, w2, b2)
    out_fast = jax.block_until_ready(out_fast)
    assert out_fast.shape == (N, d_out)
    assert jnp.allclose(out_fast, ref, atol=5e-2, rtol=5e-2), \
        "bf16 kernel mismatch vs reference"

    print("KERNEL_OK")
</pallas_src>

<mosaic_0001>
module attributes {stable_mosaic.version = 11 : i64} {
  func.func @nystrom_kernel(%arg0: i32, %arg1: memref<128x24xf32, #tpu.memory_space<vmem>>, %arg2: memref<24x128xf32, #tpu.memory_space<vmem>>, %arg3: memref<128x128xf32, #tpu.memory_space<vmem>>, %arg4: memref<128x128xf32, #tpu.memory_space<vmem>>, %arg5: memref<1x128xf32, #tpu.memory_space<vmem>>, %arg6: memref<128x128xf32, #tpu.memory_space<vmem>>) attributes {dimension_semantics = [#tpu.dimension_semantics<parallel>], iteration_bounds = array<i64: 2>, scalar_prefetch = 0 : i64, scratch_operands = 0 : i64, tpu.core_type = #tpu.core_type<tc>, window_params = [{transform_indices = @transform_0, window_bounds = array<i64: 128, 24>}, {pipeline_mode = #tpu.pipeline_mode<synchronous>, transform_indices = @transform_1, window_bounds = array<i64: 24, 128>}, {pipeline_mode = #tpu.pipeline_mode<synchronous>, transform_indices = @transform_2, window_bounds = array<i64: 128, 128>}, {pipeline_mode = #tpu.pipeline_mode<synchronous>, transform_indices = @transform_3, window_bounds = array<i64: 128, 128>}, {pipeline_mode = #tpu.pipeline_mode<synchronous>, transform_indices = @transform_4, window_bounds = array<i64: 1, 128>}, {transform_indices = @transform_5, window_bounds = array<i64: 128, 128>}]} {
    %c0 = arith.constant 0 : index
    %c0_0 = arith.constant 0 : index
    %0 = vector.load %arg1[%c0, %c0_0] : memref<128x24xf32, #tpu.memory_space<vmem>>, vector<128x24xf32>
    %c0_1 = arith.constant 0 : index
    %c0_2 = arith.constant 0 : index
    %1 = vector.load %arg2[%c0_1, %c0_2] : memref<24x128xf32, #tpu.memory_space<vmem>>, vector<24x128xf32>
    %cst = arith.constant dense<0.000000e+00> : vector<128x128xf32>
    %2 = tpu.matmul %0, %1, %cst {dimension_numbers = #tpu.dot_dimension_numbers<[1], [0], [0], [1], [0, 0, 1, 1], [], []>, precision = #tpu.contract_precision<fp32>} : vector<128x24xf32>, vector<24x128xf32>, vector<128x128xf32> -> vector<128x128xf32>
    %cst_3 = arith.constant 0.000000e+00 : f32
    %3 = vector.broadcast %cst_3 : f32 to vector<128x128xf32>
    %4 = arith.maximumf %2, %3 : vector<128x128xf32>
    %5 = math.sqrt %4 : vector<128x128xf32>
    %cst_4 = arith.constant 0.000000e+00 : f32
    %6 = vector.broadcast %cst_4 : f32 to vector<128x128xf32>
    %7 = arith.subf %6, %5 : vector<128x128xf32>
    %8 = math.exp %7 : vector<128x128xf32>
    %c0_5 = arith.constant 0 : index
    %c0_6 = arith.constant 0 : index
    %9 = vector.load %arg3[%c0_5, %c0_6] : memref<128x128xf32, #tpu.memory_space<vmem>>, vector<128x128xf32>
    %cst_7 = arith.constant dense<0.000000e+00> : vector<128x128xf32>
    %10 = tpu.matmul %8, %9, %cst_7 {dimension_numbers = #tpu.dot_dimension_numbers<[1], [0], [0], [1], [0, 0, 1, 1], [], []>} : vector<128x128xf32>, vector<128x128xf32>, vector<128x128xf32> -> vector<128x128xf32>
    %11 = math.absf %10 : vector<128x128xf32>
    %cst_8 = arith.constant 0.000000e+00 : f32
    %12 = vector.broadcast %cst_8 : f32 to vector<128x128xf32>
    %13 = arith.subf %12, %11 : vector<128x128xf32>
    %14 = math.exp %13 : vector<128x128xf32>
    %15 = arith.mulf %14, %14 : vector<128x128xf32>
    %cst_9 = arith.constant 0.000000e+00 : f32
    %16 = vector.broadcast %cst_9 : f32 to vector<128x128xf32>
    %17 = arith.cmpf oge, %10, %16 : vector<128x128xf32>
    %cst_10 = arith.constant 2.000000e+00 : f32
    %18 = vector.broadcast %cst_10 : f32 to vector<128x128xf32>
    %19 = arith.mulf %18, %14 : vector<128x128xf32>
    %cst_11 = arith.constant 1.000000e+00 : f32
    %20 = vector.broadcast %cst_11 : f32 to vector<128x128xf32>
    %21 = arith.addf %20, %19 : vector<128x128xf32>
    %cst_12 = arith.constant 2.000000e+00 : f32
    %22 = vector.broadcast %cst_12 : f32 to vector<128x128xf32>
    %23 = arith.mulf %22, %14 : vector<128x128xf32>
    %24 = arith.addf %15, %23 : vector<128x128xf32>
    %25 = arith.select %17, %21, %24 : vector<128x128xi1>, vector<128x128xf32>
    %cst_13 = arith.constant 2.000000e+00 : f32
    %26 = vector.broadcast %cst_13 : f32 to vector<128x128xf32>
    %27 = arith.mulf %26, %14 : vector<128x128xf32>
    %cst_14 = arith.constant 1.000000e+00 : f32
    %28 = vector.broadcast %cst_14 : f32 to vector<128x128xf32>
    %29 = arith.addf %28, %27 : vector<128x128xf32>
    %cst_15 = arith.constant 2.000000e+00 : f32
    %30 = vector.broadcast %cst_15 : f32 to vector<128x128xf32>
    %31 = arith.mulf %30, %15 : vector<128x128xf32>
    %32 = arith.addf %29, %31 : vector<128x128xf32>
    %cst_16 = arith.constant 2.000000e+00 : f32
    %33 = vector.broadcast %cst_16 : f32 to vector<128x128xf32>
    %34 = arith.mulf %33, %14 : vector<128x128xf32>
    %35 = arith.addf %15, %34 : vector<128x128xf32>
    %cst_17 = arith.constant 2.000000e+00 : f32
    %36 = vector.broadcast %cst_17 : f32 to vector<128x128xf32>
    %37 = arith.addf %35, %36 : vector<128x128xf32>
    %38 = arith.select %17, %32, %37 : vector<128x128xi1>, vector<128x128xf32>
    %39 = arith.divf %25, %38 : vector<128x128xf32>
    %40 = arith.mulf %10, %39 : vector<128x128xf32>
    %c0_18 = arith.constant 0 : index
    %c0_19 = arith.constant 0 : index
    %41 = vector.load %arg4[%c0_18, %c0_19] : memref<128x128xf32, #tpu.memory_space<vmem>>, vector<128x128xf32>
    %cst_20 = arith.constant dense<0.000000e+00> : vector<128x128xf32>
    %42 = tpu.matmul %40, %41, %cst_20 {dimension_numbers = #tpu.dot_dimension_numbers<[1], [0], [0], [1], [0, 0, 1, 1], [], []>} : vector<128x128xf32>, vector<128x128xf32>, vector<128x128xf32> -> vector<128x128xf32>
    %c0_21 = arith.constant 0 : index
    %c0_22 = arith.constant 0 : index
    %43 = vector.load %arg5[%c0_21, %c0_22] : memref<1x128xf32, #tpu.memory_space<vmem>>, vector<1x128xf32>
    %44 = vector.broadcast %43 : vector<1x128xf32> to vector<128x128xf32>
    %45 = arith.addf %42, %44 : vector<128x128xf32>
    %cst_23 = arith.constant dense<0xFF800000> : vector<128xf32>
    %46 = vector.multi_reduction <maximumf>, %45, %cst_23 [1] : vector<128x128xf32> to vector<128xf32>
    %47 = vector.shape_cast %46 : vector<128xf32> to vector<128x1xf32>
    %48 = vector.broadcast %47 : vector<128x1xf32> to vector<128x128xf32>
    %49 = arith.subf %45, %48 : vector<128x128xf32>
    %50 = math.exp %49 : vector<128x128xf32>
    %cst_24 = arith.constant dense<0.000000e+00> : vector<128xf32>
    %51 = vector.multi_reduction <add>, %50, %cst_24 [1] : vector<128x128xf32> to vector<128xf32>
    %52 = vector.shape_cast %51 : vector<128xf32> to vector<128x1xf32>
    %53 = math.log %52 : vector<128x1xf32>
    %54 = vector.broadcast %53 : vector<128x1xf32> to vector<128x128xf32>
    %55 = arith.subf %49, %54 : vector<128x128xf32>
    %c0_25 = arith.constant 0 : index
    %c0_26 = arith.constant 0 : index
    %56 = vector.load %arg6[%c0_25, %c0_26] : memref<128x128xf32, #tpu.memory_space<vmem>>, vector<128x128xf32>
    tpu.vector_store %arg6[%c0_25, %c0_26], %55 {strides = array<i32>} : memref<128x128xf32, #tpu.memory_space<vmem>>, vector<128x128xf32>,
    return
  }
  func.func @transform_0(%arg0: i32) -> (i32, i32) {
    %c0_i32 = arith.constant 0 : i32
    %c0_i32_0 = arith.constant 0 : i32
    return %arg0, %c0_i32 : i32, i32
  }
  func.func @transform_1(%arg0: i32) -> (i32, i32) {
    %c0_i32 = arith.constant 0 : i32
    %c0_i32_0 = arith.constant 0 : i32
    %c0_i32_1 = arith.constant 0 : i32
    return %c0_i32, %c0_i32_0 : i32, i32
  }
  func.func @transform_2(%arg0: i32) -> (i32, i32) {
    %c0_i32 = arith.constant 0 : i32
    %c0_i32_0 = arith.constant 0 : i32
    %c0_i32_1 = arith.constant 0 : i32
    return %c0_i32, %c0_i32_0 : i32, i32
  }
  func.func @transform_3(%arg0: i32) -> (i32, i32) {
    %c0_i32 = arith.constant 0 : i32
    %c0_i32_0 = arith.constant 0 : i32
    %c0_i32_1 = arith.constant 0 : i32
    return %c0_i32, %c0_i32_0 : i32, i32
  }
  func.func @transform_4(%arg0: i32) -> (i32, i32) {
    %c0_i32 = arith.constant 0 : i32
    %c0_i32_0 = arith.constant 0 : i32
    %c0_i32_1 = arith.constant 0 : i32
    return %c0_i32, %c0_i32_0 : i32, i32
  }
  func.func @transform_5(%arg0: i32) -> (i32, i32) {
    %c0_i32 = arith.constant 0 : i32
    %c0_i32_0 = arith.constant 0 : i32
    return %arg0, %c0_i32 : i32, i32
  }
}

</mosaic_0001>

<bundles_post_ra>
// kernel: tpu_custom_call.1
= control target key start
LH: loop header
LB: loop body
LE: loop exit
PB: predicated region body
PF: predicated region fallthrough
CT: control target
= control target key end

     0   :  { %10 = vsyncpa [#allocation3], 0  ;;  %s4397_s0 = inlined_call_operand.vmem [shape: f32[256,24], index: 0, kind: input, shape index: {}]   ;;  %s4398_s1 = inlined_call_operand.vmem [shape: f32[24,128], index: 1, kind: input, shape index: {}]   ;;  %s4399_s2 = inlined_call_operand.vmem [shape: f32[128,128], index: 2, kind: input, shape index: {}]   ;;  %s4400_s3 = inlined_call_operand.vmem [shape: f32[128,128], index: 3, kind: input, shape index: {}]   ;;  %s4401_s4 = inlined_call_operand.vmem [shape: f32[1,128], index: 4, kind: input, shape index: {}]   ;;  %s4402_s5 = inlined_call_operand.hbm [shape: f32[256,128], index: 5, kind: output, shape index: {}]  }
   0x1   :  { %12 = vsyncpa [#allocation3 + $0x1], 0  ;;  %s3422_s18 = smov 0   ;;  %s3424_s19 = smov 0  }
   0x2   :  { %s3426_s20 = smov 0   ;;  %s3428_s21 = smov 0  }
   0x3 LB: > { %s3443_s22 = sadd.s32 4294967295, %s3387_s21   ;;  %s2440_s23 = sadd.s32 4294967294, %s3387_s21   ;;  %s3387_s21 = sphi %s3428_s21, %s4408_s21   ;;  %s3383_s20 = sphi %s3426_s20, %s4407_s20   ;;  %s3379_s19 = sphi %s3424_s19, %s4406_s19   ;;  %s3375_s18 = sphi %s3422_s18, %s4405_s18  }
   0x4   : > { %s3447_s24 = sadd.s32 1, %s3387_s21   ;;  %s135_s25 = sadd.s32 1, %s3383_s20 }
   0x5   : > { %s132_s26 = ssub.s32 %s3387_s21, %s3447_s24  ;;  %p145_p0 = scmp.ne.s32.totalorder %s3383_s20, %s3379_s19 }
   0x6   : > { %p133_p1 = scmp.eq.s32.totalorder %s132_s26, 0  ;;  %p146_p2 = scmp.eq.s32.totalorder %s3443_s22, 1 }
   0x7   : > { %p151_p3 = scmp.ne.s32.totalorder %s3379_s19, %s3375_s18  ;;  %p152_p4 = scmp.eq.s32.totalorder %s2440_s23, 1 }
   0x8   : > { %s3458_s27 = scalar_select %p133_p1, %s3383_s20, %s135_s25  }
   0x9   : > { %p3460_p5 = por %p146_p2, %p145_p0  ;;  %p3464_p6 = por %p152_p4, %p151_p3 }
   0xa   : > { %p2443_p7 = scmp.ge.s32.totalorder %s3387_s21, 1  ;;  %p191_p8 = scmp.lt.s32.totalorder %s3387_s21, 3 }
   0xc   : > { %p192_p9 = pnand %p2443_p7, %p191_p8 }
   0xd   : > { %v242_v0 = vld [vmem:[%s4398_s1] sm:$0xff] (!%p192_p9)  ;;  %v243_v1 = vld [vmem:[%s4398_s1 + $0x8] sm:$0xff] (!%p192_p9)  ;;  %v244_v2 = vld [vmem:[%s4398_s1 + $0x10] sm:$0xff] (!%p192_p9)  ;;  %s2445_s11 = sshll.u32 (!%p192_p9), %s3443_s22, 4  ;;  %vm245_vm0 = vcmask (!%p192_p9), 195584   ;;  %s216_s23 = sand.u32 (!%p192_p9), 1, %s3379_s19  }
   0xe   : > { %195 = sbr.rel (%p192_p9) target bundleno = 1222 (0x4c6), region = 40  ;;  %v295_v3 = vand.u32 (!%p192_p9), 4294901760, %v242_v0  ;;  %v298_v4 = vand.u32 (!%p192_p9), 4294901760, %v243_v1  ;;  %v3480_v5 = vand.u32 (!%p192_p9), 4294901760, %v244_v2  ;;  %p220_p10 = scmp.lt.s32.totalorder (!%p192_p9), %s2445_s11, 31 }
   0xf   : > { %s2444_s25 = sshll.u32 (!%p192_p9), %s216_s23, 7  ;;  %s2453_s30 = sshll.u32 (!%p192_p9), %s3443_s22, 11 }
  0x10   : > { %v3482_v6 = vpack.c.bf16 (!%p192_p9), %v298_v4, %v295_v3  ;;  %v3484_v7 = vsub.f32 (!%p192_p9), %v242_v0, %v295_v3  ;;  %v3486_v8 = vsub.f32 (!%p192_p9), %v243_v1, %v298_v4  ;;  %v3491_v10 = vsub.f32 (!%p192_p9), %v244_v2, %v3480_v5  ;;  %s4312_s26 = scalar_lea.vmem (!%p192_p9), [#allocation2], %s2444_s25  ;;  %s4347_s9 = scalar_lea.hbm (!%p192_p9), %s4402_s5, %s2453_s30 }
  0x11   : > { %s2378_s6 = sshll.u32 (!%p192_p9), %s4312_s26, 4  ;;  %s4356_s22 = scalar_lea.sflag (!%p192_p9), [#allocation3], %s216_s23  ;;  %s4349_s6 = int_to_ptr.vmem [resolvable:$true] %s2378_s6 }
  0x12   : > { %v2932_v9 = vpack.c.bf16 (!%p192_p9), %v3486_v8, %v3484_v7  ;;  %2925 = vmatprep.subr.bf16.mxu1 (!%p192_p9), %v3482_v6  ;;  %v525_v37 = vand.u32 (!%p192_p9), 4294901760, %v3484_v7  ;;  %v532_v38 = vand.u32 (!%p192_p9), 4294901760, %v3486_v8  ;;  %s3325_s10 = scalar_lea.vmem (!%p192_p9), %s4349_s6, 2048 }
  0x13   : > { %2927 = vmatpush3.bf16.msra.mxu1 (!%p192_p9), %v3482_v6  ;;  %p3326_p11 = scmp.ne.s32.totalorder (!%p192_p9), %s4349_s6, %s3325_s10 }
  0x14   : > { %2933 = vmatprep.subr.bf16.mxu0 (!%p192_p9), %v2932_v9  ;;  %2636 = vmatprep.subr.mxu1 (!%p192_p9), %v3480_v5  ;;  %v3564_v47 = vpack.c.bf16 (!%p192_p9), %v532_v38, %v525_v37 }
  0x15   : > { %s4410_s11 = smov (!%p220_p10, %s2445_s11), 31  ;;  %2935 = vmatpush3.bf16.msra.mxu0 %v2932_v9  ;;  %p3327_p12 = pnand %p3326_p11, %p3460_p5 }
  0x16   : > { %s2446_s12 = sshll.u32 %s4410_s11, 3  ;;  %2696 = vmatprep.subr.mxu0 %v3491_v10  ;;  %s3389_s11 = smov [#allocation2]  }
  0x17   : > { %s3497_s15 = scalar_lea.vmem %s4397_s0, %s2446_s12  ;;  %2637 = vmatpush3.msra.mxu1 %v3480_v5  ;;  %p3328_p13 = pneg %p3327_p12 }
  0x18   : > { %v226_v11 = vld [vmem:[%s3497_s15] sm:$0xff]  ;;  %v227_v12 = vld [vmem:[%s3497_s15 + $0x8] sm:$0xff]  ;;  %v228_v13 = vld [vmem:[%s3497_s15 + $0x10] sm:$0xff]  ;;  %s3329_s12 = sshll.u32 %s3389_s11, 4  ;;  %s3330_s12 = int_to_ptr.vmem [resolvable:$false] %s3329_s12 }
  0x19   : > { %v247_v14 = vsel %vm245_vm0, %v226_v11, 0  ;;  %v250_v15 = vsel %vm245_vm0, %v227_v12, 0  ;;  %v253_v16 = vsel %vm245_vm0, %v228_v13, 0  ;;  %v229_v17 = vld [vmem:[%s3497_s15 + $0x18] sm:$0xff]  ;;  %v230_v18 = vld [vmem:[%s3497_s15 + $0x20] sm:$0xff]  ;;  %v231_v19 = vld [vmem:[%s3497_s15 + $0x28] sm:$0xff]  ;;  %2697 = vmatpush3.msra.mxu0 %v3491_v10  ;;  %p3332_p0 = scmp.lt.s32.totalorder %s4349_s6, %s3330_s12 }
  0x1a   : > { %v3511_v20 = vand.u32 4294901760, %v247_v14  ;;  %v3513_v21 = vand.u32 4294901760, %v250_v15  ;;  %v3515_v22 = vand.u32 4294901760, %v253_v16  ;;  %v256_v23 = vsel %vm245_vm0, %v229_v17, 0  ;;  %v232_v24 = vld [vmem:[%s3497_s15 + $0x30] sm:$0xff]  ;;  %v233_v25 = vld [vmem:[%s3497_s15 + $0x38] sm:$0xff]  ;;  %2937 = vmatprep.subr.bf16.mxu0 %v3482_v6 }
  0x1b   : > { %v3520_v26 = vand.u32 4294901760, %v256_v23  ;;  %v259_v27 = vsel %vm245_vm0, %v230_v18, 0  ;;  %v262_v28 = vsel %vm245_vm0, %v231_v19, 0  ;;  %v265_v29 = vsel %vm245_vm0, %v232_v24, 0  ;;  %v234_v34 = vld [vmem:[%s3497_s15 + $0x40] sm:$0xff]  ;;  %v235_v36 = vld [vmem:[%s3497_s15 + $0x48] sm:$0xff] }
  0x1c   : > { %v3527_v30 = vsub.f32 %v247_v14, %v3511_v20  ;;  %v3530_v31 = vsub.f32 %v250_v15, %v3513_v21  ;;  %v3533_v32 = vsub.f32 %v253_v16, %v3515_v22  ;;  %v3535_v33 = vand.u32 4294901760, %v259_v27  ;;  %v236_v46 = vld [vmem:[%s3497_s15 + $0x50] sm:$0xff]  ;;  %v237_v49 = vld [vmem:[%s3497_s15 + $0x58] sm:$0xff]  ;;  %v238_v50 = vld [vmem:[%s3497_s15 + $0x60] sm:$0xff]  ;;  %s3331_s13 = scalar_lea.vmem %s3330_s12, 4096 }
  0x1d   : > { %v268_v35 = vsel %vm245_vm0, %v233_v25, 0  ;;  %v3547_v39 = vsub.f32 %v256_v23, %v3520_v26  ;;  %v3549_v40 = vand.u32 4294901760, %v262_v28  ;;  %v3551_v41 = vand.u32 4294901760, %v265_v29  ;;  %v239_v3 = vld [vmem:[%s3497_s15 + $0x68] sm:$0xff]  ;;  %v240_v12 = vld [vmem:[%s3497_s15 + $0x70] sm:$0xff]  ;;  %p3333_p1 = scmp.lt.s32.totalorder %s3331_s13, %s3325_s10 }
  0x1e   : > { %2698 = vmatprep.mubr.f32.mxu0 %v3527_v30  ;;  %v271_v42 = vsel %vm245_vm0, %v234_v34, 0  ;;  %v3557_v43 = vsub.f32 %v259_v27, %v3535_v33  ;;  %v3559_v44 = vand.u32 4294901760, %v268_v35  ;;  %v274_v45 = vsel %vm245_vm0, %v235_v36, 0 }
  0x1f   : > { %2699 = vmatmul.mubr.f32.vlgmr.msra.gmra.mrb[0].mxu0 %v3530_v31  ;;  %v3566_v48 = vand.u32 4294901760, %v271_v42  ;;  %v3572_v51 = vsub.f32 %v262_v28, %v3549_v40  ;;  %v3575_v52 = vsub.f32 %v265_v29, %v3551_v41  ;;  %v3577_v53 = vand.u32 4294901760, %v274_v45  ;;  %v241_v29 = vld [vmem:[%s3497_s15 + $0x78] sm:$0xff]  ;;  %p3334_p2 = por %p3333_p1, %p3332_p0 }
  0x20   : > { %2939 = vmatpush3.bf16.msra.mxu0 %v3482_v6  ;;  %2701 = vmatprep.mubr.f32.mxu0 %v3533_v32  ;;  %v3581_v54 = vsub.f32 %v268_v35, %v3559_v44  ;;  %v277_v55 = vsel %vm245_vm0, %v236_v46, 0  ;;  %v364_v56 = vand.u32 4294901760, %v3527_v30  ;;  %v374_v57 = vand.u32 4294901760, %v3530_v31 }
  0x21   : > { %2726 = vmatprep.subr.mxu0 %v3480_v5  ;;  %v280_v58 = vsel %vm245_vm0, %v237_v49, 0  ;;  %v283_v59 = vsel %vm245_vm0, %v238_v50, 0  ;;  %v384_v60 = vand.u32 4294901760, %v3533_v32  ;;  %v394_v61 = vand.u32 4294901760, %v3547_v39  ;;  %p3335_p3 = pnand %p3334_p2, %p3328_p13 }
  0x22   : > { %v3593_v62 = vsub.f32 %v271_v42, %v3566_v48  ;;  %v365_v63 = vsub.f32 %v3527_v30, %v364_v56  ;;  %v375_v0 = vsub.f32 %v3530_v31, %v374_v57  ;;  %v404_v1 = vand.u32 4294901760, %v3557_v43  ;;  %v1591_v31 = vld [vmem:[%s4399_s2 + $0x20] sm:$0xff] }
  0x23   : > { %2702 = vmatmul.mubr.f32.gmra.mrb[2].mxu0 %v3547_v39  ;;  %v3603_v2 = vand.u32 4294901760, %v277_v55  ;;  %v385_v4 = vsub.f32 %v3533_v32, %v384_v60  ;;  %v395_v9 = vsub.f32 %v3547_v39, %v394_v61  ;;  %v414_v11 = vand.u32 4294901760, %v3572_v51  ;;  %v1592_v32 = vld [vmem:[%s4399_s2 + $0x28] sm:$0xff]  ;;  %v1593_v39 = vld [vmem:[%s4399_s2 + $0x30] sm:$0xff] }
  0x24   : > { %2704 = vmatprep.mubr.f32.mxu0 %v3557_v43  ;;  %2727 = vmatpush3.msra.mxu0 %v3480_v5  ;;  %v366_v13 = vand.u32 4294901760, %v365_v63  ;;  %v376_v14 = vand.u32 4294901760, %v375_v0  ;;  %v405_v15 = vsub.f32 %v3557_v43, %v404_v1  ;;  %v424_v16 = vand.u32 4294901760, %v3575_v52  ;;  %v1595_v43 = vld [vmem:[%s4399_s2 + $0x40] sm:$0xff] }
  0x25   : > { %2941 = vmatprep.subr.bf16.mxu0 %v3564_v47  ;;  %v386_v17 = vand.u32 4294901760, %v385_v4  ;;  %v3620_v18 = vand.u32 4294901760, %v3491_v10  ;;  %v526_v19 = vsub.f32 %v3484_v7, %v525_v37  ;;  %v533_v23 = vsub.f32 %v3486_v8, %v532_v38 }
  0x26   : > { %v3625_v24 = vsub.f32 %v274_v45, %v3577_v53  ;;  %v3627_v25 = vand.u32 4294901760, %v280_v58  ;;  %v3629_v27 = vand.u32 4294901760, %v283_v59  ;;  %v286_v28 = vsel %vm245_vm0, %v239_v3, 0  ;;  %2638 = vmatprep.mubr.f32.mxu1 %v366_v13 }
  0x27   : > { %2705 = vmatmul.mubr.f32.gmra.mrb[4].mxu0 %v3572_v51  ;;  %v289_v34 = vsel %vm245_vm0, %v240_v12, 0  ;;  %2639 = vmatmul.mubr.f32.vlgmr.msra.gmra.mrb[0].mxu1 %v376_v14  ;;  %v396_v35 = vand.u32 4294901760, %v395_v9  ;;  %v415_v7 = vsub.f32 %v3572_v51, %v414_v11  ;;  %v434_v8 = vand.u32 4294901760, %v3581_v54  ;;  %v1598_v51 = vld [vmem:[%s4399_s2 + $0x58] sm:$0xff] }
  0x28   : > { %2707 = vmatprep.mubr.f32.mxu0 %v3575_v52  ;;  %v3641_v36 = vsub.f32 %v277_v55, %v3603_v2  ;;  %2641 = vmatprep.mubr.f32.mxu1 %v386_v17  ;;  %v406_v37 = vand.u32 4294901760, %v405_v15  ;;  %v425_v38 = vsub.f32 %v3575_v52, %v424_v16  ;;  %v444_v42 = vand.u32 4294901760, %v3593_v62 }
  0x29   : > { %v292_v45 = vsel %vm245_vm0, %v241_v29, 0  ;;  %v527_v46 = vand.u32 4294901760, %v526_v19  ;;  %v540_v49 = vsub.f32 %v3491_v10, %v3620_v18  ;;  %v3651_v50 = vsub.f32 %v280_v58, %v3627_v25 }
  0x2a   : > { %v3653_v63 = vand.u32 4294901760, %v286_v28  ;;  %v3655_v55 = vand.u32 4294901760, %v289_v34  ;;  %v534_v0 = vand.u32 4294901760, %v533_v23  ;;  %v3659_v3 = vsub.f32 %v283_v59, %v3629_v27 }
  0x2b   : > { %2708 = vmatmul.mubr.f32.gmra.mrb[6].mxu0 %v3581_v54  ;;  %2642 = vmatmul.mubr.f32.gmra.mrb[2].mxu1 %v396_v35  ;;  %v416_v4 = vand.u32 4294901760, %v415_v7  ;;  %v435_v9 = vsub.f32 %v3581_v54, %v434_v8  ;;  %v454_v10 = vand.u32 4294901760, %v3625_v24  ;;  %v426_v58 = vand.u32 4294901760, %v425_v38  ;;  %v1600_v54 = vld [vmem:[%s4399_s2 + $0x68] sm:$0xff] }
  0x2c   : > { %2710 = vmatprep.mubr.f32.mxu0 %v3593_v62  ;;  %2644 = vmatprep.mubr.f32.mxu1 %v406_v37  ;;  %v445_v12 = vsub.f32 %v3593_v62, %v444_v42  ;;  %v464_v13 = vand.u32 4294901760, %v3641_v36  ;;  %v2928_v59 = vpack.c.bf16 %v534_v0, %v527_v46  ;;  %v3670_v14 = vand.u32 4294901760, %v292_v45 }
  0x2d   : > { %v541_v15 = vand.u32 4294901760, %v540_v49  ;;  %v3674_v17 = vsub.f32 %v286_v28, %v3653_v63  ;;  %v436_v19 = vand.u32 4294901760, %v435_v9  ;;  %v455_v23 = vsub.f32 %v3625_v24, %v454_v10 }
  0x2e   : > { %2929 = vmatprep.subr.bf16.mxu1 %v2928_v59  ;;  %v474_v29 = vand.u32 4294901760, %v3651_v50  ;;  %v503_v35 = vsub.f32 %v289_v34, %v3655_v55  ;;  %v446_v7 = vand.u32 4294901760, %v445_v12  ;;  %v465_v37 = vsub.f32 %v3641_v36, %v464_v13 }
  0x2f   : > { %2711 = vmatmul.mubr.f32.gmra.mrb[8].mxu0 %v3625_v24  ;;  %2645 = vmatmul.mubr.f32.gmra.mrb[4].mxu1 %v416_v4  ;;  %v484_v28 = vand.u32 4294901760, %v3659_v3  ;;  %v513_v38 = vsub.f32 %v292_v45, %v3670_v14  ;;  %v456_v46 = vand.u32 4294901760, %v455_v23  ;;  %v494_v34 = vand.u32 4294901760, %v3674_v17 }
  0x30   : > { %2713 = vmatprep.mubr.f32.mxu0 %v3641_v36  ;;  %2647 = vmatprep.mubr.f32.mxu1 %v426_v58  ;;  %v475_v49 = vsub.f32 %v3651_v50, %v474_v29  ;;  %v466_v0 = vand.u32 4294901760, %v465_v37  ;;  %v504_v9 = vand.u32 4294901760, %v503_v35 }
  0x31   : > { %2931 = vmatpush3.bf16.msra.mxu1 %v2928_v59  ;;  %v485_v4 = vsub.f32 %v3659_v3, %v484_v28  ;;  %v495_v12 = vsub.f32 %v3674_v17, %v494_v34  ;;  %v514_v59 = vand.u32 4294901760, %v513_v38 }
  0x32   : > { %2666 = vmatprep.subr.mxu1 %v541_v15  ;;  %v476_v58 = vand.u32 4294901760, %v475_v49 }
  0x33   : > { %2714 = vmatmul.mubr.f32.gmra.mrb[10].mxu0 %v3651_v50  ;;  %2648 = vmatmul.mubr.f32.gmra.mrb[6].mxu1 %v436_v19  ;;  %v486_v45 = vand.u32 4294901760, %v485_v4  ;;  %v505_v50 = vsub.f32 %v503_v35, %v504_v9  ;;  %v496_v19 = vand.u32 4294901760, %v495_v12 }
  0x34   : > { %2716 = vmatprep.mubr.f32.mxu0 %v3659_v3  ;;  %2650 = vmatprep.mubr.f32.mxu1 %v446_v7  ;;  %v515_v3 = vsub.f32 %v513_v38, %v514_v59 }
  0x35   : > { %2667 = vmatpush3.msra.mxu1 %v541_v15  ;;  %v506_v15 = vand.u32 4294901760, %v505_v50 }
  0x36   : > { %v516_v30 = vand.u32 4294901760, %v515_v3 }
  0x37   : > { %2717 = vmatmul.mubr.f32.gmra.mrb[12].mxu0 %v3674_v17  ;;  %2651 = vmatmul.mubr.f32.gmra.mrb[8].mxu1 %v456_v46 }
  0x38   : > { %2719 = vmatprep.mubr.f32.mxu0 %v503_v35  ;;  %2653 = vmatprep.mubr.f32.mxu1 %v466_v0 }
  0x3b   : > { %2720 = vmatmul.mubr.f32.gmra.mrb[14].mxu0 %v513_v38  ;;  %2654 = vmatmul.mubr.f32.gmra.mrb[10].mxu1 %v476_v58 }
  0x3c   : > { %2728 = vmatprep.mubr.f32.mxu0 %v364_v56  ;;  %2656 = vmatprep.mubr.f32.mxu1 %v486_v45 }
  0x3f   : > { %2729 = vmatmul.mubr.f32.vlgmr.msra.gmra.mrb[0].mxu0 %v374_v57  ;;  %2657 = vmatmul.mubr.f32.gmra.mrb[12].mxu1 %v496_v19  ;;  %v1601_v57 = vld [vmem:[%s4399_s2 + $0x70] sm:$0xff] }
  0x40   : > { %2943 = vmatpush3.bf16.msra.mxu0 %v3564_v47  ;;  %2731 = vmatprep.mubr.f32.mxu0 %v384_v60  ;;  %v1602_v60 = vld [vmem:[%s4399_s2 + $0x78] sm:$0xff] }
  0x41   : > { %2756 = vmatprep.subr.mxu0 %v3620_v18  ;;  %2659 = vmatprep.mubr.f32.mxu1 %v506_v15 }
  0x43   : > { %2732 = vmatmul.mubr.f32.gmra.mrb[2].mxu0 %v394_v61  ;;  %2660 = vmatmul.mubr.f32.gmra.mrb[14].mxu1 %v516_v30  ;;  %v2976_v61 = vpack.c.bf16 %v1602_v60, %v1601_v57 }
  0x44   : > { %2734 = vmatprep.mubr.f32.mxu0 %v404_v1  ;;  %2757 = vmatpush3.msra.mxu0 %v3620_v18 }
  0x45   : > { %2945 = vmatprep.subr.bf16.mxu0 %v3482_v6  ;;  %2668 = vmatprep.mubr.f32.mxu1 %v3511_v20 }
  0x47   : > { %2735 = vmatmul.mubr.f32.gmra.mrb[4].mxu0 %v414_v11  ;;  %2669 = vmatmul.mubr.f32.vlgmr.msra.gmra.mrb[0].mxu1 %v3513_v21 }
  0x48   : > { %2737 = vmatprep.mubr.f32.mxu0 %v424_v16  ;;  %2671 = vmatprep.mubr.f32.mxu1 %v3515_v22 }
  0x4b   : > { %2738 = vmatmul.mubr.f32.gmra.mrb[6].mxu0 %v434_v8  ;;  %2672 = vmatmul.mubr.f32.gmra.mrb[2].mxu1 %v3520_v26 }
  0x4c   : > { %2740 = vmatprep.mubr.f32.mxu0 %v444_v42  ;;  %2674 = vmatprep.mubr.f32.mxu1 %v3535_v33 }
  0x4f   : > { %2741 = vmatmul.mubr.f32.gmra.mrb[8].mxu0 %v454_v10  ;;  %2675 = vmatmul.mubr.f32.gmra.mrb[4].mxu1 %v3549_v40 }
  0x50   : > { %2743 = vmatprep.mubr.f32.mxu0 %v464_v13  ;;  %2677 = vmatprep.mubr.f32.mxu1 %v3551_v41 }
  0x53   : > { %2744 = vmatmul.mubr.f32.gmra.mrb[10].mxu0 %v474_v29  ;;  %2678 = vmatmul.mubr.f32.gmra.mrb[6].mxu1 %v3559_v44 }
  0x54   : > { %2746 = vmatprep.mubr.f32.mxu0 %v484_v28  ;;  %2680 = vmatprep.mubr.f32.mxu1 %v3566_v48 }
  0x57   : > { %2747 = vmatmul.mubr.f32.gmra.mrb[12].mxu0 %v494_v34  ;;  %2681 = vmatmul.mubr.f32.gmra.mrb[8].mxu1 %v3577_v53 }
  0x58   : > { %2749 = vmatprep.mubr.f32.mxu0 %v504_v9  ;;  %2683 = vmatprep.mubr.f32.mxu1 %v3603_v2 }
  0x5b   : > { %2750 = vmatmul.mubr.f32.gmra.mrb[14].mxu0 %v514_v59  ;;  %2684 = vmatmul.mubr.f32.gmra.mrb[10].mxu1 %v3627_v25 }
  0x5c   : > { %2758 = vmatprep.mubr.f32.mxu0 %v3511_v20  ;;  %2686 = vmatprep.mubr.f32.mxu1 %v3629_v27 }
  0x5f   : > { %2759 = vmatmul.mubr.f32.vlgmr.msra.gmra.mrb[0].mxu0 %v3513_v21  ;;  %2687 = vmatmul.mubr.f32.gmra.mrb[12].mxu1 %v3653_v63 }
  0x60   : > { %2947 = vmatpush3.bf16.msra.mxu0 %v3482_v6  ;;  %2761 = vmatprep.mubr.f32.mxu0 %v3515_v22  ;;  %v1588_v6 = vld [vmem:[%s4399_s2 + $0x8] sm:$0xff] }
  0x61   : > { %2786 = vmatprep.subr.mxu0 %v3480_v5  ;;  %2689 = vmatprep.mubr.f32.mxu1 %v3655_v55 }
  0x63   : > { %2762 = vmatmul.mubr.f32.gmra.mrb[2].mxu0 %v3520_v26  ;;  %2690 = vmatmul.mubr.f32.gmra.mrb[14].mxu1 %v3670_v14 }
  0x64   : > { %2764 = vmatprep.mubr.f32.mxu0 %v3535_v33  ;;  %2787 = vmatpush3.msra.mxu0 %v3480_v5  ;;  %v1587_v5 = vld [vmem:[%s4399_s2] sm:$0xff] }
  0x67   : > { %2765 = vmatmul.mubr.f32.gmra.mrb[4].mxu0 %v3549_v40 }
  0x68   : > { %2767 = vmatprep.mubr.f32.mxu0 %v3551_v41 }
  0x6b   : > { %2768 = vmatmul.mubr.f32.gmra.mrb[6].mxu0 %v3559_v44 }
  0x6c   : > { %2770 = vmatprep.mubr.f32.mxu0 %v3566_v48 }
  0x6f   : > { %2771 = vmatmul.mubr.f32.gmra.mrb[8].mxu0 %v3577_v53 }
  0x70   : > { %2773 = vmatprep.mubr.f32.mxu0 %v3603_v2 }
  0x73   : > { %2774 = vmatmul.mubr.f32.gmra.mrb[10].mxu0 %v3627_v25 }
  0x74   : > { %2776 = vmatprep.mubr.f32.mxu0 %v3629_v27 }
  0x77   : > { %2777 = vmatmul.mubr.f32.gmra.mrb[12].mxu0 %v3653_v63 }
  0x78   : > { %2779 = vmatprep.mubr.f32.mxu0 %v3655_v55 }
  0x7b   : > { %2780 = vmatmul.mubr.f32.gmra.mrb[14].mxu0 %v3670_v14 }
  0x7c   : > { %2788 = vmatprep.mubr.f32.mxu0 %v3511_v20  ;;  %v2948_v20 = vpack.c.bf16 %v1588_v6, %v1587_v5 }
  0x7e   : > { %2949 = vmatprep.subr.bf16.mxu1 %v2948_v20 }
  0x7f   : > { %2789 = vmatmul.mubr.f32.vlgmr.msra.gmra.mrb[0].mxu0 %v3513_v21  ;;  %2951 = vmatpush3.bf16.msra.mxu1 %v2948_v20  ;;  %v1589_v21 = vld [vmem:[%s4399_s2 + $0x10] sm:$0xff] }
  0x80   : > { %2791 = vmatprep.mubr.f32.mxu0 %v3515_v22  ;;  %v1590_v22 = vld [vmem:[%s4399_s2 + $0x18] sm:$0xff] }
  0x83   : > { %2792 = vmatmul.mubr.f32.gmra.mrb[2].mxu0 %v3520_v26  ;;  %v2952_v26 = vpack.c.bf16 %v1590_v22, %v1589_v21 }
  0x84   : > { %2794 = vmatprep.mubr.f32.mxu0 %v3535_v33  ;;  %v2956_v33 = vpack.c.bf16 %v1592_v32, %v1591_v31 }
  0x85   : > { %2953 = vmatprep.subr.bf16.mxu1 %v2952_v26 }
  0x86   : > { %2955 = vmatpush3.bf16.msra.mxu1 %v2952_v26 }
  0x87   : > { %2795 = vmatmul.mubr.f32.gmra.mrb[4].mxu0 %v3549_v40  ;;  %2957 = vmatprep.subr.bf16.mxu1 %v2956_v33  ;;  %v1594_v40 = vld [vmem:[%s4399_s2 + $0x38] sm:$0xff] }
  0x88   : > { %2797 = vmatprep.mubr.f32.mxu0 %v3551_v41  ;;  %v2960_v41 = vpack.c.bf16 %v1594_v40, %v1593_v39 }
  0x8a   : > { %2959 = vmatpush3.bf16.msra.mxu1 %v2956_v33 }
  0x8b   : > { %2798 = vmatmul.mubr.f32.gmra.mrb[6].mxu0 %v3559_v44  ;;  %2961 = vmatprep.subr.bf16.mxu1 %v2960_v41  ;;  %v1596_v44 = vld [vmem:[%s4399_s2 + $0x48] sm:$0xff] }
  0x8c   : > { %2800 = vmatprep.mubr.f32.mxu0 %v3566_v48  ;;  %v2964_v47 = vpack.c.bf16 %v1596_v44, %v1595_v43  ;;  %v1597_v48 = vld [vmem:[%s4399_s2 + $0x50] sm:$0xff] }
  0x8d   : > { %v2968_v52 = vpack.c.bf16 %v1598_v51, %v1597_v48 }
  0x8e   : > { %2963 = vmatpush3.bf16.msra.mxu1 %v2960_v41 }
  0x8f   : > { %2801 = vmatmul.mubr.f32.gmra.mrb[8].mxu0 %v3577_v53  ;;  %2965 = vmatprep.subr.bf16.mxu1 %v2964_v47  ;;  %v1599_v53 = vld [vmem:[%s4399_s2 + $0x60] sm:$0xff] }
  0x90   : > { %2803 = vmatprep.mubr.f32.mxu0 %v3603_v2  ;;  %v2972_v56 = vpack.c.bf16 %v1600_v54, %v1599_v53 }
  0x92   : > { %2967 = vmatpush3.bf16.msra.mxu1 %v2964_v47 }
  0x93   : > { %2804 = vmatmul.mubr.f32.gmra.mrb[10].mxu0 %v3627_v25  ;;  %2969 = vmatprep.subr.bf16.mxu1 %v2968_v52 }
  0x94   : > { %2806 = vmatprep.mubr.f32.mxu0 %v3629_v27 }
  0x96   : > { %2971 = vmatpush3.bf16.msra.mxu1 %v2968_v52 }
  0x97   : > { %2807 = vmatmul.mubr.f32.gmra.mrb[12].mxu0 %v3653_v63  ;;  %2973 = vmatprep.subr.bf16.mxu1 %v2972_v56 }
  0x98   : > { %2809 = vmatprep.mubr.f32.mxu0 %v3655_v55 }
  0x9a   : > { %2975 = vmatpush3.bf16.msra.mxu1 %v2972_v56 }
  0x9b   : > { %2810 = vmatmul.mubr.f32.gmra.mrb[14].mxu0 %v3670_v14  ;;  %2977 = vmatprep.subr.bf16.mxu1 %v2976_v61 }
  0x9e   : > { %2979 = vmatpush3.bf16.msra.mxu1 %v2976_v61 }
 0x11a   : > { %v2670_v62 = vpop.f32.mrb[0].mxu1 }
 0x11b   : > { %v604_v1 = vpop.f32.mrb[1].mxu1 }
 0x11e   : > { %v2673_v2 = vpop.f32.mrb[2].mxu1 }
 0x11f   : > { %v616_v11 = vpop.f32.mrb[3].mxu1 }
 0x122   : > { %v2676_v16 = vpop.f32.mrb[4].mxu1 }
 0x123   : > { %v628_v18 = vpop.f32.mrb[5].mxu1 }
 0x126   : > { %v2679_v24 = vpop.f32.mrb[6].mxu1 }
 0x127   : > { %v640_v25 = vpop.f32.mrb[7].mxu1 }
 0x12a   : > { %v2682_v27 = vpop.f32.mrb[8].mxu1 }
 0x12b   : > { %v652_v8 = vpop.f32.mrb[9].mxu1 }
 0x12e   : > { %v3817_v36 = vpop.f32.mrb[10].mxu1 }
 0x12f   : > { %v3819_v42 = vpop.f32.mrb[11].mxu1 }
 0x132   : > { %v3821_v63 = vpop.f32.mrb[12].mxu1 }
 0x133   : > { %v3823_v55 = vpop.f32.mrb[13].mxu1 }
 0x136   : > { %v3825_v10 = vpop.f32.mrb[14].mxu1 }
 0x137   : > { %v3827_v13 = vpop.f32.mrb[15].mxu1 }
 0x152   : > { %v2790_v14 = vpop.f32.mrb[0].mxu0 }
 0x153   : > { %v3012_v17 = vadd.f32 %v2790_v14, %v2670_v62  ;;  %v1317_v23 = vpop.f32.mrb[1].mxu0 }
 0x154   : > { %v3013_v29 = vadd.f32 %v1317_v23, %v604_v1 }
 0x155   : > { %v1412_v35 = vmax.f32 %v3012_v17, 0.0 }
 0x156   : > { %v1411_v7 = vmax.f32 %v3013_v29, 0.0  ;;  %v2793_v37 = vpop.f32.mrb[2].mxu0 }
 0x157   : > { %3133 = vrsqrt.f32 %v1412_v35  ;;  %v1329_v28 = vpop.f32.mrb[3].mxu0  ;;  %v3014_v38 = vadd.f32 %v2793_v37, %v2673_v2  ;;  %vm1436_vm1 = vcmp.eq.f32.partialorder %v1412_v35, inf  ;;  %vm1438_vm2 = vcmp.eq.f32.partialorder %v1412_v35, 0.0 }
 0x158   : > { %3135 = vrsqrt.f32 %v1411_v7  ;;  %v3015_v46 = vadd.f32 %v1329_v28, %v616_v11  ;;  %v1439_v30 = vand.u32 2147483648, %v1412_v35  ;;  %vm1429_vm3 = vcmp.eq.f32.partialorder %v1411_v7, inf }
 0x159   : > { %v3829_v34 = vmax.f32 %v3014_v38, 0.0  ;;  %vm1431_vm4 = vcmp.eq.f32.partialorder %v1411_v7, 0.0  ;;  %v1432_v20 = vand.u32 2147483648, %v1411_v7 }
 0x15a   : > { %v2796_v49 = vpop.f32.mrb[4].mxu0  ;;  %v3831_v0 = vmax.f32 %v3015_v46, 0.0 }
 0x15b   : > { %v3016_v4 = vadd.f32 %v2796_v49, %v2676_v16  ;;  %v1341_v9 = vpop.f32.mrb[5].mxu0  ;;  %3137 = vrsqrt.f32 %v3829_v34  ;;  %vm1450_vm5 = vcmp.eq.f32.partialorder %v3829_v34, inf  ;;  %vm1452_vm6 = vcmp.eq.f32.partialorder %v3829_v34, 0.0 }
 0x15c   : > { %v3017_v58 = vadd.f32 %v1341_v9, %v628_v18  ;;  %3139 = vrsqrt.f32 %v3831_v0  ;;  %v1453_v39 = vand.u32 2147483648, %v3829_v34  ;;  %vm1443_vm7 = vcmp.eq.f32.partialorder %v3831_v0, inf }
 0x15d   : > { %v3835_v59 = vmax.f32 %v3016_v4, 0.0  ;;  %vm1445_vm8 = vcmp.eq.f32.partialorder %v3831_v0, 0.0  ;;  %v1446_v51 = vand.u32 2147483648, %v3831_v0 }
 0x15e   : > { %v2799_v12 = vpop.f32.mrb[6].mxu0  ;;  %v3837_v45 = vmax.f32 %v3017_v58, 0.0 }
 0x15f   : > { %v3018_v50 = vadd.f32 %v2799_v12, %v2679_v24  ;;  %v1353_v19 = vpop.f32.mrb[7].mxu0  ;;  %3141 = vrsqrt.f32 %v3835_v59  ;;  %vm1464_vm9 = vcmp.eq.f32.partialorder %v3835_v59, inf  ;;  %vm1466_vm10 = vcmp.eq.f32.partialorder %v3835_v59, 0.0 }
 0x160   : > { %v3019_v3 = vadd.f32 %v1353_v19, %v640_v25  ;;  %3143 = vrsqrt.f32 %v3837_v45  ;;  %v1467_v62 = vand.u32 2147483648, %v3835_v59  ;;  %vm1457_vm11 = vcmp.eq.f32.partialorder %v3837_v45, inf }
 0x161   : > { %v3134_v15 = vpop.eup %3133  ;;  %v3843_v26 = vmax.f32 %v3018_v50, 0.0  ;;  %vm1459_vm12 = vcmp.eq.f32.partialorder %v3837_v45, 0.0 }
 0x162   : > { %v3136_v5 = vpop.eup %3135  ;;  %v1435_v6 = vmul.f32 %v3134_v15, %v1412_v35  ;;  %v2802_v21 = vpop.f32.mrb[8].mxu0  ;;  %v3845_v31 = vmax.f32 %v3019_v3, 0.0 }
 0x163   : > { %v1428_v22 = vmul.f32 %v3136_v5, %v1411_v7  ;;  %v1365_v32 = vpop.f32.mrb[9].mxu0  ;;  %v3020_v40 = vadd.f32 %v2802_v21, %v2682_v27  ;;  %3145 = vrsqrt.f32 %v3843_v26  ;;  %vm1478_vm13 = vcmp.eq.f32.partialorder %v3843_v26, inf }
 0x164   : > { %v1437_v33 = vsel %vm1436_vm1, %v1412_v35, %v1435_v6  ;;  %v3021_v41 = vadd.f32 %v1365_v32, %v652_v8  ;;  %3147 = vrsqrt.f32 %v3845_v31  ;;  %vm1480_vm14 = vcmp.eq.f32.partialorder %v3843_v26, 0.0 }
 0x165   : > { %v1440_v43 = vsel %vm1438_vm2, %v1439_v30, %v1437_v33  ;;  %v1430_v44 = vsel %vm1429_vm3, %v1411_v7, %v1428_v22  ;;  %v3138_v53 = vpop.eup %3137  ;;  %v3861_v1 = vmax.f32 %v3020_v40, 0.0  ;;  %v1481_v49 = vand.u32 2147483648, %v3843_v26 }
 0x166   : > { %v1540_v47 = vsub.f32 0.0, %v1440_v43  ;;  %v1433_v48 = vsel %vm1431_vm4, %v1432_v20, %v1430_v44  ;;  %v2805_v52 = vpop.f32.mrb[10].mxu0  ;;  %v3140_v57 = vpop.eup %3139  ;;  %v1449_v61 = vmul.f32 %v3138_v53, %v3829_v34  ;;  %v3864_v16 = vmax.f32 %v3021_v41, 0.0 }
 0x167   : > { %v1539_v54 = vsub.f32 0.0, %v1433_v48  ;;  %v1377_v56 = vpop.f32.mrb[11].mxu0  ;;  %v1442_v11 = vmul.f32 %v3140_v57, %v3831_v0  ;;  %v3022_v18 = vadd.f32 %v2805_v52, %v3817_v36  ;;  %v1460_v36 = vand.u32 2147483648, %v3837_v45 }
 0x168   : > { %v1557_v60 = vmul.f32 1.442695, %v1540_v47  ;;  %v1451_v24 = vsel %vm1450_vm5, %v3829_v34, %v1449_v61  ;;  %vm1471_vm15 = vcmp.eq.f32.partialorder %v3845_v31, inf  ;;  %vm1473_vm0 = vcmp.eq.f32.partialorder %v3845_v31, 0.0 }
 0x169   : > { %v1555_v2 = vmul.f32 1.442695, %v1539_v54  ;;  %v3142_v27 = vpop.eup %3141  ;;  %v1454_v8 = vsel %vm1452_vm6, %v1453_v39, %v1451_v24  ;;  %v1444_v14 = vsel %vm1443_vm7, %v3831_v0, %v1442_v11  ;;  %v3895_v12 = vmax.f32 %v3022_v18, 0.0 }
 0x16a   : > { %3149 = vpow2.f32 %v1557_v60  ;;  %v2808_v25 = vpop.f32.mrb[12].mxu0  ;;  %v3144_v23 = vpop.eup %3143  ;;  %v1542_v29 = vsub.f32 0.0, %v1454_v8  ;;  %v1447_v35 = vsel %vm1445_vm8, %v1446_v51, %v1444_v14  ;;  %v1463_v7 = vmul.f32 %v3142_v27, %v3835_v59 }
 0x16b   : > { %3151 = vpow2.f32 %v1555_v2  ;;  %v1389_v17 = vpop.f32.mrb[13].mxu0  ;;  %v1541_v37 = vsub.f32 0.0, %v1447_v35  ;;  %v1456_v28 = vmul.f32 %v3144_v23, %v3837_v45  ;;  %v1474_v22 = vand.u32 2147483648, %v3845_v31 }
 0x16c   : > { %3153 = vrsqrt.f32 %v3861_v1  ;;  %v1561_v38 = vmul.f32 1.442695, %v1542_v29  ;;  %v1465_v46 = vsel %vm1464_vm9, %v3835_v59, %v1463_v7  ;;  %v3023_v32 = vadd.f32 %v1377_v56, %v3819_v42 }
 0x16d   : > { %3155 = vrsqrt.f32 %v3864_v16  ;;  %v3146_v0 = vpop.eup %3145  ;;  %v1559_v4 = vmul.f32 1.442695, %v1541_v37  ;;  %v1468_v9 = vsel %vm1466_vm10, %v1467_v62, %v1465_v46  ;;  %v1458_v58 = vsel %vm1457_vm11, %v3837_v45, %v1456_v28 }
 0x16e   : > { %v2811_v34 = vpop.f32.mrb[14].mxu0  ;;  %3157 = vpow2.f32 %v1561_v38  ;;  %v1544_v19 = vsub.f32 0.0, %v1468_v9  ;;  %v1461_v3 = vsel %vm1459_vm12, %v1460_v36, %v1458_v58  ;;  %v1477_v15 = vmul.f32 %v3146_v0, %v3843_v26  ;;  %v3148_v30 = vpop.eup %3147 }
 0x16f   : > { %v1401_v50 = vpop.f32.mrb[15].mxu0  ;;  %3159 = vpow2.f32 %v1559_v4  ;;  %v1543_v5 = vsub.f32 0.0, %v1461_v3  ;;  %v1470_v20 = vmul.f32 %v3148_v30, %v3845_v31  ;;  %v3024_v41 = vadd.f32 %v2808_v25, %v3821_v63 }
 0x170   : > { %v1565_v59 = vmul.f32 1.442695, %v1544_v19  ;;  %v1479_v6 = vsel %vm1478_vm13, %v3843_v26, %v1477_v15  ;;  %3161 = vrsqrt.f32 %v3895_v12  ;;  %v3915_v47 = vmax.f32 %v3023_v32, 0.0 }
 0x171   : > { %v1563_v45 = vmul.f32 1.442695, %v1543_v5  ;;  %v1482_v21 = vsel %vm1480_vm14, %v1481_v49, %v1479_v6  ;;  %v1472_v40 = vsel %vm1471_vm15, %v3845_v31, %v1470_v20  ;;  %v3025_v26 = vadd.f32 %v1389_v17, %v3823_v55 }
 0x172   : > { %3163 = vpow2.f32 %v1565_v59  ;;  %v1546_v39 = vsub.f32 0.0, %v1482_v21  ;;  %v1475_v44 = vsel %vm1473_vm0, %v1474_v22, %v1472_v40  ;;  %v3918_v42 = vmax.f32 %v3024_v41, 0.0 }
 0x173   : > { %3165 = vpow2.f32 %v1563_v45  ;;  %v1545_v52 = vsub.f32 0.0, %v1475_v44  ;;  %v3026_v53 = vadd.f32 %v2811_v34, %v3825_v10  ;;  %vm1492_vm1 = vcmp.eq.f32.partialorder %v3861_v1, inf }
 0x174   : > { %v3150_v33 = vpop.eup %3149  ;;  %v1569_v51 = vmul.f32 1.442695, %v1546_v39  ;;  %vm1494_vm2 = vcmp.eq.f32.partialorder %v3861_v1, 0.0  ;;  %3167 = vrsqrt.f32 %v3915_v47  ;;  %v1495_v31 = vand.u32 2147483648, %v3861_v1 }
 0x175   : > { %v3152_v43 = vpop.eup %3151  ;;  %v1567_v55 = vmul.f32 1.442695, %v1545_v52  ;;  %vm1485_vm3 = vcmp.eq.f32.partialorder %v3864_v16, inf  ;;  %v1488_v10 = vand.u32 2147483648, %v3864_v16  ;;  %vm1487_vm4 = vcmp.eq.f32.partialorder %v3864_v16, 0.0 }
 0x176   : > { %v3154_v48 = vpop.eup %3153  ;;  %2844 = vmatprep.mubr.f32.mxu1 %v3152_v43  ;;  %3169 = vpow2.f32 %v1569_v51  ;;  %v3933_v24 = vmax.f32 %v3025_v26, 0.0  ;;  %v3935_v25 = vmax.f32 %v3026_v53, 0.0  ;;  %v3027_v8 = vadd.f32 %v1401_v50, %v3827_v13 }
 0x177   : > { %v3156_v54 = vpop.eup %3155  ;;  %v1491_v63 = vmul.f32 %v3154_v48, %v3861_v1  ;;  %2845 = vmatmul.mubr.f32.vlgmr.msra.gmra.mrb[16].mxu1 %v3150_v33  ;;  %3171 = vrsqrt.f32 %v3918_v42  ;;  %vm1506_vm5 = vcmp.eq.f32.partialorder %v3895_v12, inf  ;;  %v1509_v23 = vand.u32 2147483648, %v3895_v12 }
 0x178   : > { %v1484_v56 = vmul.f32 %v3156_v54, %v3864_v16  ;;  %v3158_v60 = vpop.eup %3157  ;;  %3173 = vpow2.f32 %v1567_v55  ;;  %vm1508_vm6 = vcmp.eq.f32.partialorder %v3895_v12, 0.0  ;;  %v1425_v7 = vmax.f32 %v3027_v8, 0.0  ;;  %v2025_v8 = vld [vmem:[%s4400_s3 + $0x28] sm:$0xff] }
 0x179   : > { %v1493_v57 = vsel %vm1492_vm1, %v3861_v1, %v1491_v63  ;;  %v3160_v2 = vpop.eup %3159  ;;  %3175 = vrsqrt.f32 %v3933_v24  ;;  %vm1499_vm7 = vcmp.eq.f32.partialorder %v3915_v47, inf  ;;  %v1502_v34 = vand.u32 2147483648, %v3915_v47 }
 0x17a   : > { %v1496_v61 = vsel %vm1494_vm2, %v1495_v31, %v1493_v57  ;;  %v1486_v62 = vsel %vm1485_vm3, %v3864_v16, %v1484_v56  ;;  %v3162_v1 = vpop.eup %3161  ;;  %2847 = vmatprep.mubr.f32.mxu1 %v3160_v2  ;;  %3177 = vrsqrt.f32 %v3935_v25  ;;  %vm1501_vm8 = vcmp.eq.f32.partialorder %v3915_v47, 0.0  ;;  %v2020_v2 = vld [vmem:[%s4400_s3] sm:$0xff] }
 0x17b   : > { %v1548_v11 = vsub.f32 0.0, %v1496_v61  ;;  %v1489_v18 = vsel %vm1487_vm4, %v1488_v10, %v1486_v62  ;;  %v1505_v36 = vmul.f32 %v3162_v1, %v3895_v12  ;;  %2848 = vmatmul.mubr.f32.gmra.mrb[18].mxu1 %v3158_v60  ;;  %vm1520_vm9 = vcmp.eq.f32.partialorder %v3918_v42, inf }
 0x17c   : > { %v1547_v27 = vsub.f32 0.0, %v1489_v18  ;;  %v3164_v17 = vpop.eup %3163  ;;  %vm1522_vm10 = vcmp.eq.f32.partialorder %v3918_v42, 0.0  ;;  %vm1513_vm11 = vcmp.eq.f32.partialorder %v3933_v24, inf  ;;  %vm1515_vm12 = vcmp.eq.f32.partialorder %v3933_v24, 0.0 }
 0x17d   : > { %v1573_v14 = vmul.f32 1.442695, %v1548_v11  ;;  %v3166_v29 = vpop.eup %3165  ;;  %v1507_v35 = vsel %vm1506_vm5, %v3895_v12, %v1505_v36  ;;  %v1523_v12 = vand.u32 2147483648, %v3918_v42  ;;  %v1516_v45 = vand.u32 2147483648, %v3933_v24  ;;  %v2021_v11 = vld [vmem:[%s4400_s3 + $0x8] sm:$0xff]  ;;  %v2026_v36 = vld [vmem:[%s4400_s3 + $0x30] sm:$0xff] }
 0x17e   : > { %v1571_v16 = vmul.f32 1.442695, %v1547_v27  ;;  %v1510_v13 = vsel %vm1508_vm6, %v1509_v23, %v1507_v35  ;;  %2850 = vmatprep.mubr.f32.mxu1 %v3166_v29  ;;  %v3168_v37 = vpop.eup %3167  ;;  %vm1534_vm13 = vcmp.eq.f32.partialorder %v3935_v25, inf  ;;  %v1537_v33 = vand.u32 2147483648, %v3935_v25  ;;  %v2024_v27 = vld [vmem:[%s4400_s3 + $0x20] sm:$0xff]  ;;  %v2029_v29 = vld [vmem:[%s4400_s3 + $0x48] sm:$0xff] }
 0x17f   : > { %2851 = vmatmul.mubr.f32.gmra.mrb[20].mxu1 %v3164_v17  ;;  %v1498_v38 = vmul.f32 %v3168_v37, %v3915_v47  ;;  %v1550_v49 = vsub.f32 0.0, %v1510_v13  ;;  %vm1536_vm14 = vcmp.eq.f32.partialorder %v3935_v25, 0.0  ;;  %vm1527_vm15 = vcmp.eq.f32.partialorder %v1425_v7, inf  ;;  %v2027_v17 = vld [vmem:[%s4400_s3 + $0x38] sm:$0xff]  ;;  %v2028_v23 = vld [vmem:[%s4400_s3 + $0x40] sm:$0xff]  ;;  %v2030_v13 = vld [vmem:[%s4400_s3 + $0x50] sm:$0xff] }
 0x180   : > { %3179 = vpow2.f32 %v1571_v16  ;;  %v3170_v28 = vpop.eup %3169  ;;  %vm1529_vm0 = vcmp.eq.f32.partialorder %v1425_v7, 0.0  ;;  %v2980_v18 = vpack.c.bf16 %v2021_v11, %v2020_v2  ;;  %v2992_v16 = vpack.c.bf16 %v2027_v17, %v2026_v36 }
 0x181   : > { %3181 = vpow2.f32 %v1573_v14  ;;  %v3172_v46 = vpop.eup %3171  ;;  %v1500_v4 = vsel %vm1499_vm7, %v3915_v47, %v1498_v38  ;;  %v1577_v15 = vmul.f32 1.442695, %v1550_v49  ;;  %v2988_v14 = vpack.c.bf16 %v2025_v8, %v2024_v27  ;;  %v2033_v38 = vld [vmem:[%s4400_s3 + $0x68] sm:$0xff]  ;;  %v2034_v49 = vld [vmem:[%s4400_s3 + $0x70] sm:$0xff] }
 0x182   : > { %3183 = vrsqrt.f32 %v1425_v7  ;;  %v3174_v0 = vpop.eup %3173  ;;  %v1519_v9 = vmul.f32 %v3172_v46, %v3918_v42  ;;  %v1503_v58 = vsel %vm1501_vm8, %v1502_v34, %v1500_v4  ;;  %2981 = vmatprep.subr.bf16.mxu1 %v2980_v18  ;;  %v2996_v35 = vpack.c.bf16 %v2029_v29, %v2028_v23  ;;  %v2035_v34 = vld [vmem:[%s4400_s3 + $0x78] sm:$0xff] }
 0x183   : > { %2853 = vmatprep.mubr.f32.mxu1 %v3174_v0  ;;  %v1549_v50 = vsub.f32 0.0, %v1503_v58  ;;  %v3176_v3 = vpop.eup %3175  ;;  %2983 = vmatpush3.bf16.msra.mxu1 %v2980_v18  ;;  %v3008_v0 = vpack.c.bf16 %v2035_v34, %v2034_v49 }
 0x184   : > { %v1521_v19 = vsel %vm1520_vm9, %v3918_v42, %v1519_v9  ;;  %2854 = vmatmul.mubr.f32.gmra.mrb[22].mxu1 %v3170_v28  ;;  %v3178_v5 = vpop.eup %3177  ;;  %v1512_v6 = vmul.f32 %v3176_v3, %v3933_v24  ;;  %v1530_v42 = vand.u32 2147483648, %v1425_v7  ;;  %v2032_v28 = vld [vmem:[%s4400_s3 + $0x60] sm:$0xff] }
 0x185   : > { %v1524_v30 = vsel %vm1522_vm10, %v1523_v12, %v1521_v19  ;;  %v1575_v59 = vmul.f32 1.442695, %v1549_v50  ;;  %v1533_v21 = vmul.f32 %v3178_v5, %v3935_v25  ;;  %v3004_v46 = vpack.c.bf16 %v2033_v38, %v2032_v28 }
 0x186   : > { %v1552_v20 = vsub.f32 0.0, %v1524_v30  ;;  %v1514_v32 = vsel %vm1513_vm11, %v3933_v24, %v1512_v6  ;;  %v2022_v24 = vld [vmem:[%s4400_s3 + $0x10] sm:$0xff] }
 0x187   : > { %3185 = vpow2.f32 %v1575_v59  ;;  %v1517_v40 = vsel %vm1515_vm12, %v1516_v45, %v1514_v32  ;;  %v1535_v41 = vsel %vm1534_vm13, %v3935_v25, %v1533_v21  ;;  %v2023_v25 = vld [vmem:[%s4400_s3 + $0x18] sm:$0xff] }
 0x188   : > { %3187 = vpow2.f32 %v1577_v15  ;;  %v1551_v44 = vsub.f32 0.0, %v1517_v40  ;;  %v1538_v47 = vsel %vm1536_vm14, %v1537_v33, %v1535_v41  ;;  %v1581_v26 = vmul.f32 1.442695, %v1552_v20 }
 0x189   : > { %v1554_v52 = vsub.f32 0.0, %v1538_v47  ;;  %v2984_v1 = vpack.c.bf16 %v2023_v25, %v2022_v24 }
 0x18a   : > { %v3180_v22 = vpop.eup %3179  ;;  %v1579_v51 = vmul.f32 1.442695, %v1551_v44 }
 0x18b   : > { %v3182_v39 = vpop.eup %3181  ;;  %2856 = vmatprep.mubr.f32.mxu1 %v3180_v22  ;;  %v1585_v55 = vmul.f32 1.442695, %v1554_v52  ;;  %2985 = vmatprep.subr.bf16.mxu1 %v2984_v1 }
 0x18c   : > { %v3184_v43 = vpop.eup %3183  ;;  %2857 = vmatmul.mubr.f32.gmra.mrb[24].mxu1 %v3182_v39  ;;  %3189 = vpow2.f32 %v1579_v51 }
 0x18d   : > { %v1526_v48 = vmul.f32 %v3184_v43, %v1425_v7  ;;  %3191 = vpow2.f32 %v1581_v26  ;;  %2987 = vmatpush3.bf16.msra.mxu1 %v2984_v1 }
 0x18e   : > { %2989 = vmatprep.subr.bf16.mxu1 %v2988_v14 }
 0x18f   : > { %v1528_v53 = vsel %vm1527_vm15, %v1425_v7, %v1526_v48  ;;  %v2031_v7 = vld [vmem:[%s4400_s3 + $0x58] sm:$0xff] }
 0x190   : > { %v1531_v54 = vsel %vm1529_vm0, %v1530_v42, %v1528_v53  ;;  %v3000_v37 = vpack.c.bf16 %v2031_v7, %v2030_v13 }
 0x191   : > { %v1553_v63 = vsub.f32 0.0, %v1531_v54  ;;  %v3186_v56 = vpop.eup %3185  ;;  %2991 = vmatpush3.bf16.msra.mxu1 %v2988_v14 }
 0x192   : > { %v3188_v57 = vpop.eup %3187  ;;  %2859 = vmatprep.mubr.f32.mxu1 %v3186_v56  ;;  %2993 = vmatprep.subr.bf16.mxu1 %v2992_v16 }
 0x193   : > { %v1583_v31 = vmul.f32 1.442695, %v1553_v63  ;;  %2860 = vmatmul.mubr.f32.gmra.mrb[26].mxu1 %v3188_v57 }
 0x195   : > { %3193 = vpow2.f32 %v1583_v31  ;;  %2995 = vmatpush3.bf16.msra.mxu1 %v2992_v16 }
 0x196   : > { %3195 = vpow2.f32 %v1585_v55  ;;  %v3190_v10 = vpop.eup %3189  ;;  %2997 = vmatprep.subr.bf16.mxu1 %v2996_v35 }
 0x197   : > { %v3192_v60 = vpop.eup %3191  ;;  %2862 = vmatprep.mubr.f32.mxu1 %v3190_v10 }
 0x198   : > { %2863 = vmatmul.mubr.f32.gmra.mrb[28].mxu1 %v3192_v60 }
 0x199   : > { %2999 = vmatpush3.bf16.msra.mxu1 %v2996_v35 }
 0x19a   : > { %3001 = vmatprep.subr.bf16.mxu1 %v3000_v37 }
 0x19d   : > { %3003 = vmatpush3.bf16.msra.mxu1 %v3000_v37 }
 0x19e   : > { %3005 = vmatprep.subr.bf16.mxu1 %v3004_v46 }
 0x19f   : > { %v3194_v61 = vpop.eup %3193 }
 0x1a0   : > { %v3196_v62 = vpop.eup %3195  ;;  %2865 = vmatprep.mubr.f32.mxu1 %v3194_v61 }
 0x1a1   : > { %2866 = vmatmul.mubr.f32.gmra.mrb[30].mxu1 %v3196_v62 }
 0x1a2   : > { %3007 = vmatpush3.bf16.msra.mxu1 %v3004_v46 }
 0x1a3   : > { %3009 = vmatprep.subr.bf16.mxu1 %v3008_v0 }
 0x1a6   : > { %3011 = vmatpush3.bf16.msra.mxu1 %v3008_v0 }
 0x24a   : > { %v4013_v4 = vpop.f32.mrb[16].mxu1 }
 0x24b   : > { %v1749_v9 = vand.u32 2147483647, %v4013_v4  ;;  %v4016_v58 = vpop.f32.mrb[17].mxu1  ;;  %vm1829_vm1 = vcmp.ge.f32.partialorder %v4013_v4, 0.0 }
 0x24c   : > { %v1748_v12 = vand.u32 2147483647, %v4016_v58  ;;  %vm1828_vm2 = vcmp.ge.f32.partialorder %v4016_v58, 0.0 }
 0x24d   : > { %v1765_v50 = vsub.f32 0.0, %v1749_v9 }
 0x24e   : > { %v1764_v19 = vsub.f32 0.0, %v1748_v12  ;;  %v4019_v30 = vpop.f32.mrb[18].mxu1 }
 0x24f   : > { %v1782_v3 = vmul.f32 1.442695, %v1765_v50  ;;  %v1751_v5 = vand.u32 2147483647, %v4019_v30  ;;  %v4022_v59 = vpop.f32.mrb[19].mxu1  ;;  %vm1831_vm3 = vcmp.ge.f32.partialorder %v4019_v30, 0.0 }
 0x250   : > { %v1780_v15 = vmul.f32 1.442695, %v1764_v19  ;;  %v1750_v6 = vand.u32 2147483647, %v4022_v59  ;;  %vm1830_vm4 = vcmp.ge.f32.partialorder %v4022_v59, 0.0 }
 0x251   : > { %3197 = vpow2.f32 %v1782_v3  ;;  %v1767_v20 = vsub.f32 0.0, %v1751_v5 }
 0x252   : > { %3199 = vpow2.f32 %v1780_v15  ;;  %v1766_v45 = vsub.f32 0.0, %v1750_v6  ;;  %v4025_v21 = vpop.f32.mrb[20].mxu1 }
 0x253   : > { %v1786_v22 = vmul.f32 1.442695, %v1767_v20  ;;  %v1753_v32 = vand.u32 2147483647, %v4025_v21  ;;  %v4028_v33 = vpop.f32.mrb[21].mxu1  ;;  %vm1833_vm5 = vcmp.ge.f32.partialorder %v4025_v21, 0.0 }
 0x254   : > { %v1784_v39 = vmul.f32 1.442695, %v1766_v45  ;;  %v1752_v40 = vand.u32 2147483647, %v4028_v33  ;;  %vm1832_vm6 = vcmp.ge.f32.partialorder %v4028_v33, 0.0 }
 0x255   : > { %3201 = vpow2.f32 %v1786_v22  ;;  %v1769_v41 = vsub.f32 0.0, %v1753_v32 }
 0x256   : > { %3203 = vpow2.f32 %v1784_v39  ;;  %v1768_v43 = vsub.f32 0.0, %v1752_v40 }
 0x257   : > { %v1790_v44 = vmul.f32 1.442695, %v1769_v41  ;;  %v4031_v47 = vpop.f32.mrb[22].mxu1 }
 0x258   : > { %v1788_v26 = vmul.f32 1.442695, %v1768_v43  ;;  %v1755_v48 = vand.u32 2147483647, %v4031_v47  ;;  %v4034_v51 = vpop.f32.mrb[23].mxu1  ;;  %vm1835_vm7 = vcmp.ge.f32.partialorder %v4031_v47, 0.0 }
 0x259   : > { %3205 = vpow2.f32 %v1790_v44  ;;  %v1754_v42 = vand.u32 2147483647, %v4034_v51  ;;  %vm1834_vm8 = vcmp.ge.f32.partialorder %v4034_v51, 0.0 }
 0x25a   : > { %3207 = vpow2.f32 %v1788_v26  ;;  %v1771_v55 = vsub.f32 0.0, %v1755_v48 }
 0x25b   : > { %v3198_v52 = vpop.eup %3197  ;;  %v1770_v57 = vsub.f32 0.0, %v1754_v42 }
 0x25c   : > { %v3200_v53 = vpop.eup %3199  ;;  %v1813_v54 = vmul.f32 %v3198_v52, %v3198_v52  ;;  %v1845_v63 = vmul.f32 2.0, %v3198_v52  ;;  %v1794_v62 = vmul.f32 1.442695, %v1771_v55 }
 0x25d   : > { %v1812_v31 = vmul.f32 %v3200_v53, %v3200_v53  ;;  %v1844_v56 = vmul.f32 2.0, %v3200_v53  ;;  %v1792_v24 = vmul.f32 1.442695, %v1770_v57 }
 0x25e   : > { %v1861_v10 = vadd.f32 1.0, %v1845_v63  ;;  %v1877_v60 = vadd.f32 %v1845_v63, %v1813_v54  ;;  %v1909_v61 = vmul.f32 2.0, %v1813_v54  ;;  %3209 = vpow2.f32 %v1794_v62 }
 0x25f   : > { %v1860_v2 = vadd.f32 1.0, %v1844_v56  ;;  %v1876_v11 = vadd.f32 %v1844_v56, %v1812_v31  ;;  %v1908_v18 = vmul.f32 2.0, %v1812_v31  ;;  %v4038_v25 = vpop.f32.mrb[24].mxu1  ;;  %v3202_v14 = vpop.eup %3201  ;;  %3211 = vpow2.f32 %v1792_v24 }
 0x260   : > { %v1925_v1 = vadd.f32 %v1909_v61, %v1861_v10  ;;  %v1941_v27 = vadd.f32 2.0, %v1877_v60  ;;  %v4041_v8 = vpop.f32.mrb[25].mxu1  ;;  %v3204_v16 = vpop.eup %3203  ;;  %v1815_v29 = vmul.f32 %v3202_v14, %v3202_v14  ;;  %v1847_v35 = vmul.f32 2.0, %v3202_v14 }
 0x261   : > { %v1924_v36 = vadd.f32 %v1908_v18, %v1860_v2  ;;  %v1940_v17 = vadd.f32 2.0, %v1876_v11  ;;  %v1814_v7 = vmul.f32 %v3204_v16, %v3204_v16  ;;  %v1846_v37 = vmul.f32 2.0, %v3204_v16 }
 0x262   : > { %v1957_v23 = vsel %vm1829_vm1, %v1925_v1, %v1941_v27  ;;  %v4049_v28 = vadd.f32 1.0, %v1847_v35  ;;  %v4051_v38 = vadd.f32 %v1847_v35, %v1815_v29  ;;  %v1911_v46 = vmul.f32 2.0, %v1815_v29 }
 0x263   : > { %3213 = vrcp.f32 %v1957_v23  ;;  %v1956_v13 = vsel %vm1828_vm2, %v1924_v36, %v1940_v17  ;;  %v3206_v49 = vpop.eup %3205  ;;  %v4054_v34 = vadd.f32 1.0, %v1846_v37  ;;  %v4056_v0 = vadd.f32 %v1846_v37, %v1814_v7 }
 0x264   : > { %3215 = vrcp.f32 %v1956_v13  ;;  %v1910_v9 = vmul.f32 2.0, %v1814_v7  ;;  %v3208_v12 = vpop.eup %3207  ;;  %v1893_v50 = vsel %vm1829_vm1, %v1861_v10, %v1877_v60  ;;  %v1927_v19 = vadd.f32 %v1911_v46, %v4049_v28 }
 0x265   : > { %v1943_v3 = vadd.f32 2.0, %v4051_v38  ;;  %v1817_v15 = vmul.f32 %v3206_v49, %v3206_v49  ;;  %v1942_v6 = vadd.f32 2.0, %v4056_v0  ;;  %v1849_v20 = vmul.f32 2.0, %v3206_v49 }
 0x266   : > { %v1926_v5 = vadd.f32 %v1910_v9, %v4054_v34  ;;  %v1757_v45 = vand.u32 2147483647, %v4038_v25  ;;  %v1816_v39 = vmul.f32 %v3208_v12, %v3208_v12  ;;  %v1848_v40 = vmul.f32 2.0, %v3208_v12  ;;  %v4074_v26 = vpop.f32.mrb[26].mxu1 }
 0x267   : > { %v1959_v22 = vsel %vm1831_vm3, %v1927_v19, %v1943_v3  ;;  %v1913_v32 = vmul.f32 2.0, %v1817_v15  ;;  %v4070_v43 = vadd.f32 1.0, %v1849_v20  ;;  %v4072_v44 = vadd.f32 %v1849_v20, %v1817_v15  ;;  %v4078_v54 = vpop.f32.mrb[27].mxu1 }
 0x268   : > { %3217 = vrcp.f32 %v1959_v22  ;;  %v1958_v41 = vsel %vm1830_vm4, %v1926_v5, %v1942_v6  ;;  %v3210_v48 = vpop.eup %3209  ;;  %v4076_v52 = vadd.f32 1.0, %v1848_v40  ;;  %v1880_v42 = vadd.f32 %v1848_v40, %v1816_v39 }
 0x269   : > { %3219 = vrcp.f32 %v1958_v41  ;;  %v1912_v53 = vmul.f32 2.0, %v1816_v39  ;;  %v3212_v63 = vpop.eup %3211  ;;  %v1892_v55 = vsel %vm1828_vm2, %v1860_v2, %v1876_v11  ;;  %v1929_v31 = vadd.f32 %v1913_v32, %v4070_v43 }
 0x26a   : > { %v1945_v56 = vadd.f32 2.0, %v4072_v44  ;;  %v1819_v57 = vmul.f32 %v3210_v48, %v3210_v48  ;;  %v1944_v60 = vadd.f32 2.0, %v1880_v42  ;;  %v1851_v61 = vmul.f32 2.0, %v3210_v48 }
 0x26b   : > { %v1928_v10 = vadd.f32 %v1912_v53, %v4076_v52  ;;  %v1773_v62 = vsub.f32 0.0, %v1757_v45  ;;  %v1818_v27 = vmul.f32 %v3212_v63, %v3212_v63  ;;  %v1850_v14 = vmul.f32 2.0, %v3212_v63  ;;  %v4095_v35 = vpop.f32.mrb[28].mxu1 }
 0x26c   : > { %v1961_v24 = vsel %vm1833_vm5, %v1929_v31, %v1945_v56  ;;  %v1915_v1 = vmul.f32 2.0, %v1819_v57  ;;  %v4089_v11 = vadd.f32 1.0, %v1851_v61  ;;  %v4091_v23 = vadd.f32 %v1851_v61, %v1819_v57  ;;  %v4101_v46 = vpop.f32.mrb[29].mxu1 }
 0x26d   : > { %v3214_v18 = vpop.eup %3213  ;;  %3221 = vrcp.f32 %v1961_v24  ;;  %v1960_v2 = vsel %vm1832_vm6, %v1928_v10, %v1944_v60  ;;  %v4093_v29 = vadd.f32 1.0, %v1850_v14  ;;  %v4099_v7 = vadd.f32 %v1850_v14, %v1818_v27 }
 0x26e   : > { %v3216_v36 = vpop.eup %3215  ;;  %v1975_v17 = vmul.f32 %v3214_v18, %v1893_v50  ;;  %3223 = vrcp.f32 %v1960_v2  ;;  %v1931_v13 = vadd.f32 %v1915_v1, %v4089_v11  ;;  %v1914_v37 = vmul.f32 2.0, %v1818_v27 }
 0x26f   : > { %v1973_v16 = vmul.f32 %v3216_v36, %v1892_v55  ;;  %v1947_v9 = vadd.f32 2.0, %v4091_v23  ;;  %v1798_v12 = vmul.f32 1.442695, %v1773_v62  ;;  %v1895_v19 = vsel %vm1831_vm3, %v4049_v28, %v4051_v38 }
 0x270   : > { %v2005_v50 = vmul.f32 %v4013_v4, %v1975_v17  ;;  %v1930_v3 = vadd.f32 %v1914_v37, %v4093_v29  ;;  %v1946_v15 = vadd.f32 2.0, %v4099_v7  ;;  %v1756_v4 = vand.u32 2147483647, %v4041_v8 }
 0x271   : > { %v2004_v49 = vmul.f32 %v1973_v16, %v4016_v58  ;;  %v1894_v58 = vsel %vm1830_vm4, %v4054_v34, %v4056_v0  ;;  %v1963_v6 = vsel %vm1835_vm7, %v1931_v13, %v1947_v9  ;;  %3225 = vpow2.f32 %v1798_v12 }
 0x272   : > { %v3218_v5 = vpop.eup %3217  ;;  %3227 = vrcp.f32 %v1963_v6  ;;  %v1962_v28 = vsel %vm1834_vm8, %v1930_v3, %v1946_v15  ;;  %v1759_v38 = vand.u32 2147483647, %v4074_v26  ;;  %v1772_v34 = vsub.f32 0.0, %v1756_v4 }
 0x273   : > { %2900 = vmatprep.mubr.f32.mxu1 %v2004_v49  ;;  %v3220_v20 = vpop.eup %3219  ;;  %v1979_v45 = vmul.f32 %v3218_v5, %v1895_v19  ;;  %3229 = vrcp.f32 %v1962_v28  ;;  %v1897_v39 = vsel %vm1833_vm5, %v4070_v43, %v4072_v44  ;;  %v1758_v41 = vand.u32 2147483647, %v4078_v54 }
 0x274   : > { %v4123_v22 = vpop.f32.mrb[30].mxu1  ;;  %2901 = vmatmul.mubr.f32.vlgmr.msra.gmra.mrb[32].mxu1 %v2005_v50  ;;  %v1977_v32 = vmul.f32 %v3220_v20, %v1894_v58  ;;  %v1775_v40 = vsub.f32 0.0, %v1759_v38  ;;  %v1896_v53 = vsel %vm1832_vm6, %v4076_v52, %v1880_v42  ;;  %v1796_v63 = vmul.f32 1.442695, %v1772_v34 }
 0x275   : > { %v4125_v0 = vpop.f32.mrb[31].mxu1  ;;  %v1761_v55 = vand.u32 2147483647, %v4095_v35  ;;  %v2007_v56 = vmul.f32 %v4019_v30, %v1979_v45  ;;  %v1774_v10 = vsub.f32 0.0, %v1758_v41  ;;  %v1760_v60 = vand.u32 2147483647, %v4101_v46 }
 0x276   : > { %v2006_v48 = vmul.f32 %v1977_v32, %v4022_v59  ;;  %v1802_v57 = vmul.f32 1.442695, %v1775_v40  ;;  %3231 = vpow2.f32 %v1796_v63  ;;  %v1763_v59 = vand.u32 2147483647, %v4123_v22 }
 0x277   : > { %v3222_v31 = vpop.eup %3221  ;;  %v1777_v61 = vsub.f32 0.0, %v1761_v55  ;;  %v1800_v52 = vmul.f32 1.442695, %v1774_v10  ;;  %v1776_v42 = vsub.f32 0.0, %v1760_v60  ;;  %v1762_v27 = vand.u32 2147483647, %v4125_v0 }
 0x278   : > { %v3224_v43 = vpop.eup %3223  ;;  %v1983_v44 = vmul.f32 %v3222_v31, %v1897_v39  ;;  %2903 = vmatprep.mubr.f32.mxu1 %v2006_v48  ;;  %3233 = vpow2.f32 %v1802_v57  ;;  %v1779_v24 = vsub.f32 0.0, %v1763_v59  ;;  %v1899_v17 = vsel %vm1835_vm7, %v4089_v11, %v4091_v23 }
 0x279   : > { %v1981_v62 = vmul.f32 %v3224_v43, %v1896_v53  ;;  %2904 = vmatmul.mubr.f32.gmra.mrb[34].mxu1 %v2007_v56  ;;  %v1806_v18 = vmul.f32 1.442695, %v1777_v61  ;;  %3235 = vpow2.f32 %v1800_v52  ;;  %v1804_v1 = vmul.f32 1.442695, %v1776_v42 }
 0x27a   : > { %v2009_v36 = vmul.f32 %v4025_v21, %v1983_v44  ;;  %v1810_v2 = vmul.f32 1.442695, %v1779_v24  ;;  %v1778_v49 = vsub.f32 0.0, %v1762_v27  ;;  %v1898_v21 = vsel %vm1834_vm8, %v4093_v29, %v4099_v7 }
 0x27b   : > { %v2008_v30 = vmul.f32 %v1981_v62, %v4028_v33  ;;  %v3226_v14 = vpop.eup %3225  ;;  %3237 = vpow2.f32 %v1806_v18  ;;  %vm1837_vm9 = vcmp.ge.f32.partialorder %v4038_v25, 0.0  ;;  %vm1836_vm10 = vcmp.ge.f32.partialorder %v4041_v8, 0.0 }
 0x27c   : > { %v3228_v16 = vpop.eup %3227  ;;  %v1821_v13 = vmul.f32 %v3226_v14, %v3226_v14  ;;  %v1853_v37 = vmul.f32 2.0, %v3226_v14  ;;  %3239 = vpow2.f32 %v1804_v1  ;;  %v1808_v19 = vmul.f32 1.442695, %v1778_v49 }
 0x27d   : > { %2906 = vmatprep.mubr.f32.mxu1 %v2008_v30  ;;  %v3230_v33 = vpop.eup %3229  ;;  %v1987_v9 = vmul.f32 %v3228_v16, %v1899_v17  ;;  %3241 = vpow2.f32 %v1810_v2  ;;  %vm1839_vm11 = vcmp.ge.f32.partialorder %v4074_v26, 0.0  ;;  %vm1838_vm12 = vcmp.ge.f32.partialorder %v4078_v54, 0.0 }
 0x27e   : > { %2907 = vmatmul.mubr.f32.gmra.mrb[36].mxu1 %v2009_v36  ;;  %v1985_v12 = vmul.f32 %v3230_v33, %v1898_v21  ;;  %v4151_v50 = vadd.f32 1.0, %v1853_v37  ;;  %v4153_v11 = vadd.f32 %v1853_v37, %v1821_v13  ;;  %v1917_v23 = vmul.f32 2.0, %v1821_v13 }
 0x27f   : > { %v2011_v6 = vmul.f32 %v4031_v47, %v1987_v9  ;;  %3243 = vpow2.f32 %v1808_v19  ;;  %vm1841_vm13 = vcmp.ge.f32.partialorder %v4095_v35, 0.0  ;;  %vm1840_vm14 = vcmp.ge.f32.partialorder %v4101_v46, 0.0 }
 0x280   : > { %v2010_v3 = vmul.f32 %v1985_v12, %v4034_v51  ;;  %v1933_v15 = vadd.f32 %v1917_v23, %v4151_v50  ;;  %v1949_v5 = vadd.f32 2.0, %v4153_v11  ;;  %v3232_v58 = vpop.eup %3231  ;;  %vm1843_vm15 = vcmp.ge.f32.partialorder %v4123_v22, 0.0 }
 0x281   : > { %v1820_v29 = vmul.f32 %v3232_v58, %v3232_v58  ;;  %v1852_v7 = vmul.f32 2.0, %v3232_v58  ;;  %vm1842_vm0 = vcmp.ge.f32.partialorder %v4125_v0, 0.0 }
 0x282   : > { %v3234_v4 = vpop.eup %3233  ;;  %2909 = vmatprep.mubr.f32.mxu1 %v2010_v3  ;;  %v1965_v20 = vsel %vm1837_vm9, %v1933_v15, %v1949_v5 }
 0x283   : > { %v1823_v45 = vmul.f32 %v3234_v4, %v3234_v4  ;;  %v1855_v28 = vmul.f32 2.0, %v3234_v4  ;;  %2910 = vmatmul.mubr.f32.gmra.mrb[38].mxu1 %v2011_v6  ;;  %v3236_v51 = vpop.eup %3235  ;;  %v4163_v38 = vadd.f32 1.0, %v1852_v7  ;;  %v4165_v32 = vadd.f32 %v1852_v7, %v1820_v29 }
 0x284   : > { %v1916_v47 = vmul.f32 2.0, %v1820_v29  ;;  %v1822_v48 = vmul.f32 %v3236_v51, %v3236_v51  ;;  %3245 = vrcp.f32 %v1965_v20  ;;  %v1854_v31 = vmul.f32 2.0, %v3236_v51 }
 0x285   : > { %v3238_v34 = vpop.eup %3237  ;;  %v4167_v39 = vadd.f32 1.0, %v1855_v28  ;;  %v4169_v40 = vadd.f32 %v1855_v28, %v1823_v45  ;;  %v1919_v41 = vmul.f32 2.0, %v1823_v45  ;;  %v1948_v55 = vadd.f32 2.0, %v4165_v32 }
 0x286   : > { %v3240_v53 = vpop.eup %3239  ;;  %v1932_v63 = vadd.f32 %v1916_v47, %v4163_v38  ;;  %v1918_v10 = vmul.f32 2.0, %v1822_v48  ;;  %v1870_v43 = vadd.f32 1.0, %v1854_v31  ;;  %v1886_v44 = vadd.f32 %v1854_v31, %v1822_v48 }
 0x287   : > { %v1935_v56 = vadd.f32 %v1919_v41, %v4167_v39  ;;  %v1951_v57 = vadd.f32 2.0, %v4169_v40  ;;  %v1825_v61 = vmul.f32 %v3238_v34, %v3238_v34  ;;  %v3242_v59 = vpop.eup %3241  ;;  %v1857_v52 = vmul.f32 2.0, %v3238_v34 }
 0x288   : > { %v1964_v60 = vsel %vm1836_vm10, %v1932_v63, %v1948_v55  ;;  %v1824_v42 = vmul.f32 %v3240_v53, %v3240_v53  ;;  %v1934_v18 = vadd.f32 %v1918_v10, %v1870_v43  ;;  %v1950_v24 = vadd.f32 2.0, %v1886_v44 }
 0x289   : > { %3247 = vrcp.f32 %v1964_v60  ;;  %v1967_v62 = vsel %vm1839_vm11, %v1935_v56, %v1951_v57  ;;  %v1873_v30 = vadd.f32 1.0, %v1857_v52  ;;  %v1889_v1 = vadd.f32 %v1857_v52, %v1825_v61  ;;  %v3244_v36 = vpop.eup %3243 }
 0x28a   : > { %3249 = vrcp.f32 %v1967_v62  ;;  %v1921_v27 = vmul.f32 2.0, %v1825_v61  ;;  %v1856_v14 = vmul.f32 2.0, %v3240_v53  ;;  %v1966_v17 = vsel %vm1838_vm12, %v1934_v18, %v1950_v24 }
 0x28b   : > { %v1920_v2 = vmul.f32 2.0, %v1824_v42  ;;  %v1827_v16 = vmul.f32 %v3242_v59, %v3242_v59  ;;  %v1859_v13 = vmul.f32 2.0, %v3242_v59  ;;  %3251 = vrcp.f32 %v1966_v17 }
 0x28c   : > { %v1937_v37 = vadd.f32 %v1921_v27, %v1873_v30  ;;  %v1953_v49 = vadd.f32 2.0, %v1889_v1  ;;  %v1872_v33 = vadd.f32 1.0, %v1856_v14  ;;  %v1888_v9 = vadd.f32 %v1856_v14, %v1824_v42 }
 0x28d   : > { %v1875_v21 = vadd.f32 1.0, %v1859_v13  ;;  %v1891_v23 = vadd.f32 %v1859_v13, %v1827_v16  ;;  %v1923_v19 = vmul.f32 2.0, %v1827_v16  ;;  %v1826_v3 = vmul.f32 %v3244_v36, %v3244_v36 }
 0x28e   : > { %v1969_v12 = vsel %vm1841_vm13, %v1937_v37, %v1953_v49  ;;  %v3246_v15 = vpop.eup %3245  ;;  %v1936_v5 = vadd.f32 %v1920_v2, %v1872_v33  ;;  %v1952_v58 = vadd.f32 2.0, %v1888_v9  ;;  %v1901_v29 = vsel %vm1837_vm9, %v4151_v50, %v4153_v11 }
 0x28f   : > { %3253 = vrcp.f32 %v1969_v12  ;;  %v1939_v6 = vadd.f32 %v1923_v19, %v1875_v21  ;;  %v1955_v4 = vadd.f32 2.0, %v1891_v23  ;;  %v1858_v7 = vmul.f32 2.0, %v3244_v36 }
 0x290   : > { %v1922_v20 = vmul.f32 2.0, %v1826_v3  ;;  %v1991_v28 = vmul.f32 %v3246_v15, %v1901_v29  ;;  %v1900_v51 = vsel %vm1836_vm10, %v4163_v38, %v4165_v32  ;;  %v1968_v47 = vsel %vm1840_vm14, %v1936_v5, %v1952_v58 }
 0x291   : > { %v1971_v34 = vsel %vm1843_vm15, %v1939_v6, %v1955_v4  ;;  %3255 = vrcp.f32 %v1968_v47  ;;  %v1874_v50 = vadd.f32 1.0, %v1858_v7  ;;  %v1890_v11 = vadd.f32 %v1858_v7, %v1826_v3 }
 0x292   : > { %v1903_v53 = vsel %vm1839_vm11, %v4167_v39, %v4169_v40  ;;  %3257 = vrcp.f32 %v1971_v34  ;;  %v2013_v31 = vmul.f32 %v4038_v25, %v1991_v28  ;;  %v1902_v57 = vsel %vm1838_vm12, %v1870_v43, %v1886_v44 }
 0x293   : > { %v3248_v45 = vpop.eup %3247  ;;  %v1938_v38 = vadd.f32 %v1922_v20, %v1874_v50  ;;  %v1954_v32 = vadd.f32 2.0, %v1890_v11  ;;  %v1905_v25 = vsel %vm1841_vm13, %v1873_v30, %v1889_v1  ;;  %v1904_v61 = vsel %vm1840_vm14, %v1872_v33, %v1888_v9 }
 0x294   : > { %v3250_v41 = vpop.eup %3249  ;;  %v1989_v48 = vmul.f32 %v3248_v45, %v1900_v51  ;;  %v1906_v24 = vsel %vm1842_vm0, %v1874_v50, %v1890_v11 }
 0x295   : > { %v3252_v55 = vpop.eup %3251  ;;  %v1995_v56 = vmul.f32 %v3250_v41, %v1903_v53  ;;  %v1970_v60 = vsel %vm1842_vm0, %v1938_v38, %v1954_v32 }
 0x296   : > { %v2012_v63 = vmul.f32 %v1989_v48, %v4041_v8  ;;  %v1993_v10 = vmul.f32 %v3252_v55, %v1902_v57  ;;  %3259 = vrcp.f32 %v1970_v60 }
 0x297   : > { %v2015_v40 = vmul.f32 %v4074_v26, %v1995_v56 }
 0x298   : > { %2912 = vmatprep.mubr.f32.mxu1 %v2012_v63  ;;  %v2014_v8 = vmul.f32 %v1993_v10, %v4078_v54  ;;  %v1907_v54 = vsel %vm1843_vm15, %v1875_v21, %v1891_v23 }
 0x299   : > { %2913 = vmatmul.mubr.f32.gmra.mrb[40].mxu1 %v2013_v31  ;;  %v3254_v39 = vpop.eup %3253 }
 0x29a   : > { %2915 = vmatprep.mubr.f32.mxu1 %v2014_v8  ;;  %v1999_v44 = vmul.f32 %v3254_v39, %v1905_v25 }
 0x29b   : > { %v3256_v43 = vpop.eup %3255 }
 0x29c   : > { %v1997_v59 = vmul.f32 %v3256_v43, %v1904_v61  ;;  %v3258_v62 = vpop.eup %3257  ;;  %v2017_v42 = vmul.f32 %v4095_v35, %v1999_v44  ;;  %v2447_v35 = vld [vmem:[%s4401_s4] ss:$0 sm:$0xff] }
 0x29d   : > { %2916 = vmatmul.mubr.f32.gmra.mrb[42].mxu1 %v2015_v40  ;;  %v2003_v18 = vmul.f32 %v3258_v62, %v1907_v54 }
 0x29e   : > { %v2016_v52 = vmul.f32 %v1997_v59, %v4101_v46 }
 0x29f   : > { %v2019_v27 = vmul.f32 %v4123_v22, %v2003_v18 }
 0x2a0   : > { %v3260_v26 = vpop.eup %3259  ;;  %2918 = vmatprep.mubr.f32.mxu1 %v2016_v52 }
 0x2a1   : > { %v2001_v30 = vmul.f32 %v3260_v26, %v1906_v24  ;;  %2919 = vmatmul.mubr.f32.gmra.mrb[44].mxu1 %v2017_v42 }
 0x2a3   : > { %v2018_v1 = vmul.f32 %v2001_v30, %v4125_v0 }
 0x2a5   : > { %2921 = vmatprep.mubr.f32.mxu1 %v2018_v1 }
 0x2a6   : > { %2922 = vmatmul.mubr.f32.gmra.mrb[46].mxu1 %v2019_v27 }
 0x347   : > { %v2902_v46 = vpop.f32.mrb[32].mxu1 }
 0x348   : > { %v2115_v14 = vadd.f32 %v2902_v46, %v2447_v35  ;;  %v2109_v36 = vpop.f32.mrb[33].mxu1 }
 0x349   : > { %v2110_v17 = vadd.f32 %v2447_v35, %v2109_v36 }
 0x34a   : > { %2190 = vmax.xlane.f32.xlu0 %v2115_v14 }
 0x34c   : > { %v2905_v2 = vpop.f32.mrb[34].mxu1 }
 0x34d   : > { %v2125_v16 = vadd.f32 %v2905_v2, %v2447_v35  ;;  %v2119_v13 = vpop.f32.mrb[35].mxu1 }
 0x34e   : > { %2188 = vmax.xlane.f32.xlu0 %v2110_v17  ;;  %v2120_v37 = vadd.f32 %v2447_v35, %v2119_v13 }
 0x34f   : > { %2194 = vmax.xlane.f32.xlu1 %v2125_v16 }
 0x351   : > { %v2908_v0 = vpop.f32.mrb[36].mxu1 }
 0x352   : > { %v2129_v49 = vpop.f32.mrb[37].mxu1  ;;  %v2135_v33 = vadd.f32 %v2908_v0, %v2447_v35 }
 0x353   : > { %v2130_v22 = vadd.f32 %v2447_v35, %v2129_v49  ;;  %2192 = vmax.xlane.f32.xlu1 %v2120_v37 }
 0x355   : > { %2196 = vmax.xlane.f32.xlu0 %v2130_v22 }
 0x356   : > { %v2911_v9 = vpop.f32.mrb[38].mxu1 }
 0x357   : > { %2198 = vmax.xlane.f32.xlu1 %v2135_v33  ;;  %v2139_v21 = vpop.f32.mrb[39].mxu1  ;;  %v2145_v12 = vadd.f32 %v2911_v9, %v2447_v35 }
 0x358   : > { %v2140_v23 = vadd.f32 %v2447_v35, %v2139_v21 }
 0x35a   : > { %2200 = vmax.xlane.f32.xlu0 %v2140_v23 }
 0x35b   : > { %2202 = vmax.xlane.f32.xlu1 %v2145_v12 }
 0x36c   : > { %v2914_v19 = vpop.f32.mrb[40].mxu1 }
 0x36d   : > { %v4228_v3 = vadd.f32 %v2914_v19, %v2447_v35  ;;  %v2149_v15 = vpop.f32.mrb[41].mxu1 }
 0x36e   : > { %v4230_v5 = vadd.f32 %v2447_v35, %v2149_v15 }
 0x36f   : > { %2206 = vmax.xlane.f32.xlu1 %v4228_v3 }
 0x370   : > { %v2917_v58 = vpop.f32.mrb[42].mxu1  ;;  %2204 = vmax.xlane.f32.xlu0 %v4230_v5 }
 0x371   : > { %v4234_v6 = vadd.f32 %v2917_v58, %v2447_v35  ;;  %v2159_v4 = vpop.f32.mrb[43].mxu1 }
 0x372   : > { %v4236_v29 = vadd.f32 %v2447_v35, %v2159_v4 }
 0x373   : > { %2210 = vmax.xlane.f32.xlu1 %v4234_v6 }
 0x374   : > { %2208 = vmax.xlane.f32.xlu0 %v4236_v29  ;;  %v2920_v7 = vpop.f32.mrb[44].mxu1 }
 0x375   : > { %v4240_v20 = vadd.f32 %v2920_v7, %v2447_v35  ;;  %v2169_v45 = vpop.f32.mrb[45].mxu1 }
 0x376   : > { %v4242_v28 = vadd.f32 %v2447_v35, %v2169_v45 }
 0x377   : > { %2214 = vmax.xlane.f32.xlu1 %v4240_v20 }
 0x378   : > { %2212 = vmax.xlane.f32.xlu0 %v4242_v28 }
 0x379   : > { %v2923_v51 = vpop.f32.mrb[46].mxu1 }
 0x37a   : > { %v4246_v47 = vadd.f32 %v2923_v51, %v2447_v35  ;;  %v2179_v34 = vpop.f32.mrb[47].mxu1 }
 0x37b   : > { %v4248_v41 = vadd.f32 %v2447_v35, %v2179_v34 }
 0x37c   : > { %2218 = vmax.xlane.f32.xlu1 %v4246_v47 }
 0x37d   : > { %2216 = vmax.xlane.f32.xlu0 %v4248_v41 }
 0x3d7   : > { %v2191_v48 = vpop.xlane.xlu0 %2190 }
 0x3d8   : > { %v4252_v50 = vsub.f32 %v2115_v14, %v2191_v48 }
 0x3da   : > { %v2238_v11 = vmul.f32 1.442695, %v4252_v50 }
 0x3db   : > { %v2189_v53 = vpop.xlane.xlu0 %2188 }
 0x3dc   : > { %3261 = vpow2.f32 %v2238_v11  ;;  %v4255_v63 = vsub.f32 %v2110_v17, %v2189_v53  ;;  %v2195_v38 = vpop.xlane.xlu1 %2194 }
 0x3dd   : > { %v4257_v32 = vsub.f32 %v2125_v16, %v2195_v38 }
 0x3de   : > { %v2236_v55 = vmul.f32 1.442695, %v4255_v63 }
 0x3df   : > { %v2242_v31 = vmul.f32 1.442695, %v4257_v32 }
 0x3e0   : > { %3263 = vpow2.f32 %v2236_v55  ;;  %v2193_v56 = vpop.xlane.xlu1 %2192 }
 0x3e1   : > { %3265 = vpow2.f32 %v2242_v31  ;;  %v4261_v57 = vsub.f32 %v2120_v37, %v2193_v56 }
 0x3e2   : > { %v2197_v10 = vpop.xlane.xlu0 %2196 }
 0x3e3   : > { %v2240_v60 = vmul.f32 1.442695, %v4261_v57  ;;  %v4264_v8 = vsub.f32 %v2130_v22, %v2197_v10 }
 0x3e4   : > { %v2199_v39 = vpop.xlane.xlu1 %2198 }
 0x3e5   : > { %3267 = vpow2.f32 %v2240_v60  ;;  %v2244_v25 = vmul.f32 1.442695, %v4264_v8  ;;  %v4267_v43 = vsub.f32 %v2135_v33, %v2199_v39 }
 0x3e6   : > { %v3262_v40 = vpop.eup %3261 }
 0x3e7   : > { %2270 = vadd.xlane.f32.xlu1 %v3262_v40  ;;  %v2246_v44 = vmul.f32 1.442695, %v4267_v43  ;;  %3269 = vpow2.f32 %v2244_v25  ;;  %v2201_v61 = vpop.xlane.xlu0 %2200 }
 0x3e8   : > { %v2203_v59 = vpop.xlane.xlu1 %2202  ;;  %v4270_v52 = vsub.f32 %v2140_v23, %v2201_v61 }
 0x3e9   : > { %3271 = vpow2.f32 %v2246_v44  ;;  %v4272_v42 = vsub.f32 %v2145_v12, %v2203_v59 }
 0x3ea   : > { %v3264_v62 = vpop.eup %3263  ;;  %v2248_v26 = vmul.f32 1.442695, %v4270_v52 }
 0x3eb   : > { %2268 = vadd.xlane.f32.xlu0 %v3264_v62  ;;  %v3266_v54 = vpop.eup %3265  ;;  %v2250_v18 = vmul.f32 1.442695, %v4272_v42 }
 0x3ec   : > { %2274 = vadd.xlane.f32.xlu1 %v3266_v54  ;;  %3273 = vpow2.f32 %v2248_v26 }
 0x3ed   : > { %3275 = vpow2.f32 %v2250_v18 }
 0x3ef   : > { %v3268_v24 = vpop.eup %3267 }
 0x3f0   : > { %2272 = vadd.xlane.f32.xlu0 %v3268_v24 }
 0x3f1   : > { %v3270_v30 = vpop.eup %3269 }
 0x3f3   : > { %v3272_v1 = vpop.eup %3271 }
 0x3f4   : > { %2278 = vadd.xlane.f32.xlu1 %v3272_v1  ;;  %2276 = vadd.xlane.f32.xlu0 %v3270_v30 }
 0x3f6   : > { %v3274_v27 = vpop.eup %3273 }
 0x3f7   : > { %v3276_v35 = vpop.eup %3275 }
 0x3f8   : > { %2280 = vadd.xlane.f32.xlu0 %v3274_v27  ;;  %2282 = vadd.xlane.f32.xlu1 %v3276_v35 }
 0x3fc   : > { %v2207_v46 = vpop.xlane.xlu1 %2206 }
 0x3fd   : > { %v2205_v14 = vpop.xlane.xlu0 %2204  ;;  %v4277_v36 = vsub.f32 %v4228_v3, %v2207_v46 }
 0x3fe   : > { %v4280_v17 = vsub.f32 %v4230_v5, %v2205_v14 }
 0x3ff   : > { %v2254_v2 = vmul.f32 1.442695, %v4277_v36 }
 0x400   : > { %v2252_v16 = vmul.f32 1.442695, %v4280_v17  ;;  %v2211_v13 = vpop.xlane.xlu1 %2210 }
 0x401   : > { %3277 = vpow2.f32 %v2254_v2  ;;  %v2209_v37 = vpop.xlane.xlu0 %2208  ;;  %v4285_v0 = vsub.f32 %v4234_v6, %v2211_v13 }
 0x402   : > { %3279 = vpow2.f32 %v2252_v16  ;;  %v4288_v49 = vsub.f32 %v4236_v29, %v2209_v37 }
 0x403   : > { %v2258_v22 = vmul.f32 1.442695, %v4285_v0 }
 0x404   : > { %v2256_v33 = vmul.f32 1.442695, %v4288_v49  ;;  %v2215_v9 = vpop.xlane.xlu1 %2214 }
 0x405   : > { %3281 = vpow2.f32 %v2258_v22  ;;  %v2213_v21 = vpop.xlane.xlu0 %2212  ;;  %v4293_v12 = vsub.f32 %v4240_v20, %v2215_v9 }
 0x406   : > { %3283 = vpow2.f32 %v2256_v33  ;;  %v4296_v23 = vsub.f32 %v4242_v28, %v2213_v21 }
 0x407   : > { %v2262_v19 = vmul.f32 1.442695, %v4293_v12 }
 0x408   : > { %v2260_v15 = vmul.f32 1.442695, %v4296_v23 }
 0x409   : > { %3285 = vpow2.f32 %v2262_v19  ;;  %v2219_v58 = vpop.xlane.xlu1 %2218 }
 0x40a   : > { %3287 = vpow2.f32 %v2260_v15  ;;  %v2217_v6 = vpop.xlane.xlu0 %2216  ;;  %v4301_v4 = vsub.f32 %v4246_v47, %v2219_v58 }
 0x40b   : > { %v3278_v3 = vpop.eup %3277  ;;  %v4304_v29 = vsub.f32 %v4248_v41, %v2217_v6 }
 0x40c   : > { %v3280_v5 = vpop.eup %3279  ;;  %2286 = vadd.xlane.f32.xlu1 %v3278_v3  ;;  %v2266_v20 = vmul.f32 1.442695, %v4301_v4 }
 0x40d   : > { %2284 = vadd.xlane.f32.xlu0 %v3280_v5  ;;  %v2264_v28 = vmul.f32 1.442695, %v4304_v29 }
 0x40e   : > { %3289 = vpow2.f32 %v2266_v20 }
 0x40f   : > { %v3282_v7 = vpop.eup %3281  ;;  %3291 = vpow2.f32 %v2264_v28 }
 0x410   : > { %v3284_v45 = vpop.eup %3283  ;;  %2290 = vadd.xlane.f32.xlu1 %v3282_v7 }
 0x411   : > { %2288 = vadd.xlane.f32.xlu0 %v3284_v45 }
 0x413   : > { %v3286_v51 = vpop.eup %3285 }
 0x414   : > { %v3288_v34 = vpop.eup %3287  ;;  %2294 = vadd.xlane.f32.xlu1 %v3286_v51 }
 0x415   : > { %2292 = vadd.xlane.f32.xlu0 %v3288_v34 }
 0x418   : > { %v3290_v47 = vpop.eup %3289 }
 0x419   : > { %v3292_v48 = vpop.eup %3291  ;;  %2298 = vadd.xlane.f32.xlu1 %v3290_v47 }
 0x41a   : > { %2296 = vadd.xlane.f32.xlu0 %v3292_v48 }
 0x474   : > { %v2271_v41 = vpop.xlane.xlu1 %2270 }
 0x475   : > { %3293 = vlog2.f32 %v2271_v41 }
 0x478   : > { %v2269_v11 = vpop.xlane.xlu0 %2268 }
 0x479   : > { %3295 = vlog2.f32 %v2269_v11  ;;  %v2275_v53 = vpop.xlane.xlu1 %2274 }
 0x47a   : > { %3297 = vlog2.f32 %v2275_v53 }
 0x47d   : > { %v2273_v38 = vpop.xlane.xlu0 %2272 }
 0x47e   : > { %3299 = vlog2.f32 %v2273_v38 }
 0x47f   : > { %v3294_v55 = vpop.eup %3293 }
 0x480   : > { %v2303_v31 = vmul.f32 0.6931472, %v3294_v55 }
 0x481   : > { %v2279_v10 = vpop.xlane.xlu1 %2278  ;;  %v2277_v60 = vpop.xlane.xlu0 %2276 }
 0x482   : > { %v2333_v56 = vsub.f32 %v4252_v50, %v2303_v31  ;;  %3301 = vlog2.f32 %v2279_v10 }
 0x483   : > { %v3296_v39 = vpop.eup %3295  ;;  %3303 = vlog2.f32 %v2277_v60 }
 0x484   : > { %2349 = vst [vmem:[%s4312_s26 + $0x8] sm:$0xff] %v2333_v56  ;;  %v2301_v40 = vmul.f32 0.6931472, %v3296_v39  ;;  %v3298_v25 = vpop.eup %3297 }
 0x485   : > { %v2307_v44 = vmul.f32 0.6931472, %v3298_v25  ;;  %v2281_v59 = vpop.xlane.xlu0 %2280  ;;  %v2283_v62 = vpop.xlane.xlu1 %2282 }
 0x486   : > { %v2332_v61 = vsub.f32 %v4255_v63, %v2301_v40  ;;  %3305 = vlog2.f32 %v2281_v59 }
 0x487   : > { %v2335_v50 = vsub.f32 %v4257_v32, %v2307_v44  ;;  %3307 = vlog2.f32 %v2283_v62 }
 0x488   : > { %2348 = vst [vmem:[%s4312_s26] sm:$0xff] %v2332_v61  ;;  %v3300_v54 = vpop.eup %3299 }
 0x489   : > { %2351 = vst [vmem:[%s4312_s26 + $0x18] sm:$0xff] %v2335_v50  ;;  %v2305_v26 = vmul.f32 0.6931472, %v3300_v54 }
 0x48b   : > { %v2334_v18 = vsub.f32 %v4261_v57, %v2305_v26 }
 0x48c   : > { %v3302_v24 = vpop.eup %3301 }
 0x48d   : > { %v3304_v30 = vpop.eup %3303  ;;  %2350 = vst [vmem:[%s4312_s26 + $0x10] sm:$0xff] %v2334_v18  ;;  %v2311_v63 = vmul.f32 0.6931472, %v3302_v24 }
 0x48e   : > { %v2309_v1 = vmul.f32 0.6931472, %v3304_v30 }
 0x48f   : > { %v2337_v27 = vsub.f32 %v4267_v43, %v2311_v63 }
 0x490   : > { %v3306_v35 = vpop.eup %3305  ;;  %v2336_v32 = vsub.f32 %v4264_v8, %v2309_v1 }
 0x491   : > { %v3308_v46 = vpop.eup %3307  ;;  %2353 = vst [vmem:[%s4312_s26 + $0x28] sm:$0xff] %v2337_v27  ;;  %v2313_v14 = vmul.f32 0.6931472, %v3306_v35 }
 0x492   : > { %2352 = vst [vmem:[%s4312_s26 + $0x20] sm:$0xff] %v2336_v32  ;;  %v2315_v2 = vmul.f32 0.6931472, %v3308_v46 }
 0x493   : > { %v2338_v16 = vsub.f32 %v4270_v52, %v2313_v14 }
 0x494   : > { %v2339_v57 = vsub.f32 %v4272_v42, %v2315_v2 }
 0x495   : > { %2354 = vst [vmem:[%s4312_s26 + $0x30] sm:$0xff] %v2338_v16 }
 0x496   : > { %2355 = vst [vmem:[%s4312_s26 + $0x38] sm:$0xff] %v2339_v57 }
 0x499   : > { %v2287_v13 = vpop.xlane.xlu1 %2286 }
 0x49a   : > { %3309 = vlog2.f32 %v2287_v13  ;;  %v2285_v37 = vpop.xlane.xlu0 %2284 }
 0x49b   : > { %3311 = vlog2.f32 %v2285_v37 }
 0x49d   : > { %v2291_v22 = vpop.xlane.xlu1 %2290 }
 0x49e   : > { %3313 = vlog2.f32 %v2291_v22  ;;  %v2289_v43 = vpop.xlane.xlu0 %2288 }
 0x49f   : > { %3315 = vlog2.f32 %v2289_v43 }
 0x4a1   : > { %v2295_v33 = vpop.xlane.xlu1 %2294 }
 0x4a2   : > { %3317 = vlog2.f32 %v2295_v33  ;;  %v2293_v52 = vpop.xlane.xlu0 %2292 }
 0x4a3   : > { %3319 = vlog2.f32 %v2293_v52 }
 0x4a4   : > { %v3310_v8 = vpop.eup %3309 }
 0x4a5   : > { %v3312_v9 = vpop.eup %3311  ;;  %v2319_v21 = vmul.f32 0.6931472, %v3310_v8 }
 0x4a6   : > { %v2317_v19 = vmul.f32 0.6931472, %v3312_v9  ;;  %v2299_v6 = vpop.xlane.xlu1 %2298 }
 0x4a7   : > { %v2341_v42 = vsub.f32 %v4277_v36, %v2319_v21  ;;  %3321 = vlog2.f32 %v2299_v6  ;;  %v2297_v20 = vpop.xlane.xlu0 %2296 }
 0x4a8   : > { %v3314_v3 = vpop.eup %3313  ;;  %v2340_v15 = vsub.f32 %v4280_v17, %v2317_v19  ;;  %3323 = vlog2.f32 %v2297_v20 }
 0x4a9   : > { %v3316_v5 = vpop.eup %3315  ;;  %2357 = vst [vmem:[%s4312_s26 + $0x48] sm:$0xff] %v2341_v42  ;;  %v2323_v58 = vmul.f32 0.6931472, %v3314_v3 }
 0x4aa   : > { %2356 = vst [vmem:[%s4312_s26 + $0x40] sm:$0xff] %v2340_v15  ;;  %v2321_v7 = vmul.f32 0.6931472, %v3316_v5 }
 0x4ab   : > { %v2343_v45 = vsub.f32 %v4285_v0, %v2323_v58 }
 0x4ac   : > { %v2342_v36 = vsub.f32 %v4288_v49, %v2321_v7  ;;  %v3318_v17 = vpop.eup %3317 }
 0x4ad   : > { %2359 = vst [vmem:[%s4312_s26 + $0x58] sm:$0xff] %v2343_v45  ;;  %v3320_v28 = vpop.eup %3319  ;;  %v2327_v51 = vmul.f32 0.6931472, %v3318_v17 }
 0x4ae   : > { %2358 = vst [vmem:[%s4312_s26 + $0x50] sm:$0xff] %v2342_v36  ;;  %v2325_v34 = vmul.f32 0.6931472, %v3320_v28 }
 0x4af   : > { %v2345_v47 = vsub.f32 %v4293_v12, %v2327_v51 }
 0x4b0   : > { %v2344_v48 = vsub.f32 %v4296_v23, %v2325_v34 }
 0x4b1   : > { %v3322_v41 = vpop.eup %3321  ;;  %2361 = vst [vmem:[%s4312_s26 + $0x68] sm:$0xff] %v2345_v47 }
 0x4b2   : > { %v3324_v0 = vpop.eup %3323  ;;  %2360 = vst [vmem:[%s4312_s26 + $0x60] sm:$0xff] %v2344_v48  ;;  %v2331_v49 = vmul.f32 0.6931472, %v3322_v41 }
 0x4b3   : > { %v2329_v11 = vmul.f32 0.6931472, %v3324_v0 }
 0x4b4   : > { %v2347_v53 = vsub.f32 %v4301_v4, %v2331_v49 }
 0x4b5   : > { %v2346_v12 = vsub.f32 %v4304_v29, %v2329_v11 }
 0x4b6   : > { %2363 = vst [vmem:[%s4312_s26 + $0x78] sm:$0xff] %v2347_v53 }
 0x4b7   : > { %2362 = vst [vmem:[%s4312_s26 + $0x70] sm:$0xff] %v2346_v12 }
 0x4b8   : > { %3338 = shalt.err (!%p3335_p3)
}
 0x4b9   : > { %s3339_s14 = scalar_lea.hbm %s4347_s9, 2048  ;;  %s3343_s17 = scalar_lea.hbm %s4402_s5, 4096 }
 0x4ba   : > { %p3340_p4 = scmp.ne.s32.totalorder %s4347_s9, %s3339_s14  ;;  %p3344_p9 = scmp.lt.u32.totalorder %s4347_s9, %s4402_s5 }
 0x4bb   : > { %p3345_p10 = scmp.lt.u32.totalorder %s3343_s17, %s3339_s14  ;;  %p3347_p12 = scmp.lt.u32.totalorder %s3339_s14, %s4347_s9 }
 0x4bc   : > { %p3341_p7 = pnand %p3340_p4, %p3460_p5 }
 0x4bd   : > { %p3346_p11 = por %p3345_p10, %p3344_p9 }
 0x4be   : > { %p3342_p8 = pneg %p3341_p7 }
 0x4bf   : > { %p3348_p13 = por %p3347_p12, %p3346_p11 }
 0x4c1   : > { %p3349_p0 = pnand %p3348_p13, %p3342_p8 }
 0x4c3   : > { %3352 = shalt.err (!%p3349_p0)
}
 0x4c4   : > { %s3390_s26 = smov 128   ;;  %s3391_s30 = smov 8  }
 0x4c5   : > { %3092 = dma.vmem_to_hbm [thread:$0]  (%p3460_p5), %s4349_s6, 2048, %s4347_s9, %s4356_s22, %s3390_s26, %s3390_s26, %s3391_s30  }
 0x4c6 PF: > { %p3098_p1 = scmp.ge.s32.totalorder %s3387_s21, 2  ;;  %s2393_s7 = sand.u32 1, %s3375_s18  }
 0x4c7   : > { %s2394_s8 = scalar_lea.sflag [#allocation3], %s2393_s7 }
 0x4c8   : > { %p3095_p2 = pnand %p3098_p1, %p3464_p6 }
 0x4ca   : > { %3370 = dma.done.wait (!%p3095_p2), %s2394_s8, 2048  }
 0x4cb   : > { %3372 = vsyncadd (!%p3095_p2), %s2394_s8, 4294965248  ;;  %p15_p3 = scmp.ge.s32.totalorder %s3447_s24, 4   ;;  %s4405_s18 = smov %s3379_s19 }
 0x4cc   : > { %s4406_s19 = smov %s3383_s20  ;;  %s4407_s20 = smov %s3458_s27 }
 0x4cd   : > { %s4408_s21 = smov %s3447_s24  ;;  %17 = sbr.rel (!%p15_p3) target bundleno = 3 (0x3), region = 75 }
 0x4d4   :  { %2399 = vsyncpa [#allocation3], 1 }
 0x4d5   :  { %2401 = vsyncpa [#allocation3 + $0x1], 1 }

</bundles_post_ra>
